<compile_context>
chip_gen: v7x
topology: tpu7x:2x2x1
jax: 0.10.0
libtpu: 0.0.40
codegen_flags: <defaults>
</compile_context>

<pallas_src>
import functools
import math

import jax
import jax.numpy as jnp
from jax.experimental import pallas as pl
from jax.experimental.pallas import tpu as pltpu

EPS = 1e-5
_TARGET_TILE_BYTES = 4 * 1024 * 1024      # ~4 MiB input tile (16 MiB dbl-buffered in+out)
_MIN_SPLIT_TILE_BYTES = 1 * 1024 * 1024   # never shrink tiles below ~1 MiB just to add steps
_VMEM_LIMIT_BYTES = 32 * 1024 * 1024      # safe on v5e/v6e (128 MiB) and v7x (64 MiB)
_MAX_PACK_WIDTH = 512                     # cap on L = lcm(C, 128) for the packed path


def _lane_pack_factor(c):
    """Logical rows packed per lane row: k = lcm(C,128)/C, or 1 if packing is off."""
    if c <= 0 or c % 128 == 0:
        return 1
    lcm = c * 128 // math.gcd(c, 128)
    if lcm > _MAX_PACK_WIDTH:
        return 1
    return lcm // c


def _pick_block_rows(nrows, lane_width, elem_bytes):
    """Rows per tile: ~4 MiB of (lane-padded) VMEM, aligned to the dtype's sublane
    tile.  Prefer >= 4 grid steps (2 per v7x TensorCore) but only if each tile
    stays >= ~1 MiB; small problems are left as a single big block so single-TC
    v5e/v6e don't pay per-step overhead for nothing."""
    row_align = 16 if elem_bytes < 4 else 8
    if nrows <= row_align:
        return int(nrows)                                   # single full-extent block
    padded_lanes = ((lane_width + 127) // 128) * 128        # VMEM pads lanes to 128
    bytes_per_row = padded_lanes * elem_bytes
    target = max(row_align,
                 (_TARGET_TILE_BYTES // bytes_per_row) // row_align * row_align)
    min_split = max(row_align,
                    (_MIN_SPLIT_TILE_BYTES // bytes_per_row) // row_align * row_align)
    for steps in (4, 2):
        cand = (pl.cdiv(nrows, steps) + row_align - 1) // row_align * row_align
        if cand >= min_split:
            target = min(target, cand)
            break
    # Never exceed the array extent (keep the last block ragged instead).
    target = min(target, nrows // row_align * row_align)
    return int(max(row_align, target))


def _ln_kernel_packed(x_ref, w_ref, mmean_ref, msum_ref, o_ref, *, c_eps):
    """Packed lane-dense tile: k = L/C logical rows per L-lane row.

    x_ref:     (block_rows, L) input tile.
    w_ref:     (1, L) f32 weight tiled k times and pre-scaled by sqrt(C).
    mmean_ref: (L, L) bf16 block-diagonal 1/C matrix (per-segment mean).
    msum_ref:  (L, L) bf16 block-diagonal ones matrix (per-segment sum, exact).

    Ragged last blocks also run on padded/stale rows; each output row depends
    only on its own input row and the store is clipped by Pallas, so garbage
    rows never leak into real outputs.
    """
    x = x_ref[...].astype(jnp.float32)
    # Approximate per-segment mean with a single bf16 MXU pass; its O(2^-9)
    # relative error enters the two-pass variance only quadratically.
    mean = jnp.dot(x.astype(jnp.bfloat16), mmean_ref[...],
                   preferred_element_type=jnp.float32)
    xc = x - mean
    xc2 = xc * xc
    # hi/lo bf16 split keeps ~f32 accuracy for the variance sum on the MXU.
    hi = xc2.astype(jnp.bfloat16)
    lo = (xc2 - hi.astype(jnp.float32)).astype(jnp.bfloat16)
    msum = msum_ref[...]
    sumsq = (jnp.dot(hi, msum, preferred_element_type=jnp.float32)
             + jnp.dot(lo, msum, preferred_element_type=jnp.float32))
    # rsqrt(sum(xc^2) + C*eps) * sqrt(C) == rsqrt(var + eps); sqrt(C) is folded
    # into w on the host, so no per-element 1/C multiply is needed here.
    inv = jax.lax.rsqrt(sumsq + c_eps)
    out = x * inv * w_ref[...]
    if o_ref.dtype == jnp.float32:
        o_ref[...] = out
    else:
        o_ref[...] = out.astype(o_ref.dtype)


def _ln_kernel_rowwise(x_ref, w_ref, o_ref):
    """Fallback: one logical row per vreg row; reduce over the lane axis."""
    x = x_ref[...].astype(jnp.float32)
    mean = jnp.mean(x, axis=-1, keepdims=True)
    xc = x - mean
    var = jnp.mean(xc * xc, axis=-1, keepdims=True)      # biased (ddof=0)
    inv = jax.lax.rsqrt(var + EPS)
    out = x * inv * w_ref[...]
    if o_ref.dtype == jnp.float32:
        o_ref[...] = out
    else:
        o_ref[...] = out.astype(o_ref.dtype)


def biasfree_layernorm(x, weight):
    """x: (..., C) array, weight: (C,). Returns same shape/dtype as x."""
    orig_shape = x.shape
    C = int(orig_shape[-1])
    assert weight.shape == (C,)
    rows = 1
    for d in orig_shape[:-1]:
        rows *= int(d)
    x2d = x.reshape(rows, C)
    elem_bytes = x2d.dtype.itemsize

    compiler_params = pltpu.CompilerParams(
        dimension_semantics=("parallel",),
        vmem_limit_bytes=_VMEM_LIMIT_BYTES,
    )

    k = _lane_pack_factor(C)
    # ---- Lane-dense packed path: k logical rows per L = lcm(C,128) lanes ----
    if k > 1 and rows > 0 and rows % k == 0:
        L = k * C
        prows = rows // k
        xp = x2d.reshape(prows, L)                       # contiguous -> free reshape
        # Fold sqrt(C) into the weight (f32) so the kernel can use
        # rsqrt(sum(xc^2) + C*eps) directly with no per-element 1/C multiply.
        wp = jnp.tile(weight.astype(jnp.float32) * math.sqrt(C), k).reshape(1, L)
        blocks = jnp.kron(jnp.eye(k, dtype=jnp.float32),
                          jnp.ones((C, C), dtype=jnp.float32))
        m_sum = blocks.astype(jnp.bfloat16)              # exact 0/1 in bf16
        m_mean = (blocks * (1.0 / C)).astype(jnp.bfloat16)

        block_rows = _pick_block_rows(prows, L, elem_bytes)
        grid = (pl.cdiv(prows, block_rows),)             # ragged edge clipped by Pallas

        out = pl.pallas_call(
            functools.partial(_ln_kernel_packed, c_eps=float(C) * EPS),
            out_shape=jax.ShapeDtypeStruct((prows, L), x.dtype),
            grid_spec=pltpu.PrefetchScalarGridSpec(
                num_scalar_prefetch=0,
                grid=grid,
                in_specs=[
                    pl.BlockSpec((block_rows, L), lambda i: (i, 0)),
                    pl.BlockSpec((1, L), lambda i: (0, 0)),       # resident
                    pl.BlockSpec((L, L), lambda i: (0, 0)),       # resident
                    pl.BlockSpec((L, L), lambda i: (0, 0)),       # resident
                ],
                out_specs=pl.BlockSpec((block_rows, L), lambda i: (i, 0)),
            ),
            compiler_params=compiler_params,
        )(xp, wp, m_mean, m_sum)
        return out.reshape(orig_shape)

    # ---- Row-wise fallback path (any C) --------------------------------------
    # TODO(synk): for L = lcm(C,128) > 512 on v5e, a capped (fewer-MXU-pass)
    # packed variant could still beat this lane-sparse path; left as fallback.
    w2d = weight.astype(jnp.float32).reshape(1, C)
    block_rows = _pick_block_rows(rows, C, elem_bytes)
    grid = (pl.cdiv(rows, block_rows),)

    out = pl.pallas_call(
        _ln_kernel_rowwise,
        out_shape=jax.ShapeDtypeStruct((rows, C), x.dtype),
        grid_spec=pltpu.PrefetchScalarGridSpec(
            num_scalar_prefetch=0,
            grid=grid,
            in_specs=[
                pl.BlockSpec((block_rows, C), lambda i: (i, 0)),
                pl.BlockSpec((1, C), lambda i: (0, 0)),           # resident
            ],
            out_specs=pl.BlockSpec((block_rows, C), lambda i: (i, 0)),
        ),
        compiler_params=compiler_params,
    )(x2d, w2d)
    return out.reshape(orig_shape)


def biasfree_layernorm_ref(x, weight):
    # Pure-JAX reference matching the PyTorch semantics.
    xf = x.astype(jnp.float32)
    var = jnp.var(xf, axis=-1, keepdims=True)            # ddof=0 (unbiased=False)
    return (xf / jnp.sqrt(var + EPS) * weight.astype(jnp.float32)).astype(x.dtype)


if __name__ == "__main__":
    key = jax.random.PRNGKey(0)
    k1, k2, k3, k4 = jax.random.split(key, 4)

    # PromptIR-style usage: channels-last LayerNorm over C = 48
    # (packed path: L = lcm(48, 128) = 384, k = 8 rows per lane row).
    B, H, W, C = 2, 16, 16, 48
    x = jax.random.normal(k1, (B, H, W, C), dtype=jnp.float32)
    weight = jnp.ones((C,), dtype=jnp.float32)           # nn.Parameter(torch.ones(C))

    out = jax.block_until_ready(biasfree_layernorm(x, weight))
    ref = biasfree_layernorm_ref(x, weight)
    assert out.shape == x.shape and out.dtype == x.dtype
    # Packed path uses bf16 hi/lo MXU reductions: ~1e-6..1e-5 relative error.
    assert jnp.allclose(out, ref, atol=5e-5, rtol=5e-5), "packed C=48 mismatch"

    # Non-trivial weights + offset/scaled data on a power-of-two C (L = 128, k = 4).
    C2 = 32
    x2 = jax.random.normal(k2, (2, 8, 8, C2), dtype=jnp.float32) * 2.0 + 0.5
    w2 = 1.0 + 0.1 * jax.random.normal(k3, (C2,), dtype=jnp.float32)
    out2 = jax.block_until_ready(biasfree_layernorm(x2, w2))
    ref2 = biasfree_layernorm_ref(x2, w2)
    assert jnp.allclose(out2, ref2, atol=5e-5, rtol=5e-5), "packed C=32 mismatch"

    # Row-wise fallback (C = 40: lcm(40, 128) = 640 exceeds the packing cap).
    C3 = 40
    x3 = jax.random.normal(k4, (2, 4, 8, C3), dtype=jnp.float32)
    w3 = 1.0 + 0.05 * jax.random.normal(jax.random.PRNGKey(7), (C3,), jnp.float32)
    out3 = jax.block_until_ready(biasfree_layernorm(x3, w3))
    ref3 = biasfree_layernorm_ref(x3, w3)
    assert jnp.allclose(out3, ref3, atol=1e-5, rtol=1e-5), "row-wise mismatch"

    print("KERNEL_OK")
</pallas_src>

<mosaic_0001>
module attributes {stable_mosaic.version = 11 : i64} {
  func.func @_ln_kernel_packed(%arg0: i32, %arg1: memref<64x384xf32, #tpu.memory_space<vmem>>, %arg2: memref<1x384xf32, #tpu.memory_space<vmem>>, %arg3: memref<384x384xbf16, #tpu.memory_space<vmem>>, %arg4: memref<384x384xbf16, #tpu.memory_space<vmem>>, %arg5: memref<64x384xf32, #tpu.memory_space<vmem>>) attributes {dimension_semantics = [#tpu.dimension_semantics<parallel>], iteration_bounds = array<i64: 1>, scalar_prefetch = 0 : i64, scratch_operands = 0 : i64, tpu.core_type = #tpu.core_type<tc>, window_params = [{transform_indices = @transform_0, window_bounds = array<i64: 64, 384>}, {pipeline_mode = #tpu.pipeline_mode<synchronous>, transform_indices = @transform_1, window_bounds = array<i64: 1, 384>}, {pipeline_mode = #tpu.pipeline_mode<synchronous>, transform_indices = @transform_2, window_bounds = array<i64: 384, 384>}, {pipeline_mode = #tpu.pipeline_mode<synchronous>, transform_indices = @transform_3, window_bounds = array<i64: 384, 384>}, {transform_indices = @transform_4, window_bounds = array<i64: 64, 384>}]} {
    %c0 = arith.constant 0 : index
    %c0_0 = arith.constant 0 : index
    %0 = vector.load %arg1[%c0, %c0_0] : memref<64x384xf32, #tpu.memory_space<vmem>>, vector<64x384xf32>
    %1 = arith.truncf %0 : vector<64x384xf32> to vector<64x384xbf16>
    %c0_1 = arith.constant 0 : index
    %c0_2 = arith.constant 0 : index
    %2 = vector.load %arg3[%c0_1, %c0_2] : memref<384x384xbf16, #tpu.memory_space<vmem>>, vector<384x384xbf16>
    %cst = arith.constant dense<0.000000e+00> : vector<64x384xf32>
    %3 = tpu.matmul %1, %2, %cst {dimension_numbers = #tpu.dot_dimension_numbers<[1], [0], [0], [1], [0, 0, 1, 1], [], []>} : vector<64x384xbf16>, vector<384x384xbf16>, vector<64x384xf32> -> vector<64x384xf32>
    %4 = arith.subf %0, %3 : vector<64x384xf32>
    %5 = arith.mulf %4, %4 : vector<64x384xf32>
    %6 = arith.truncf %5 : vector<64x384xf32> to vector<64x384xbf16>
    %7 = arith.extf %6 : vector<64x384xbf16> to vector<64x384xf32>
    %8 = arith.subf %5, %7 : vector<64x384xf32>
    %9 = arith.truncf %8 : vector<64x384xf32> to vector<64x384xbf16>
    %c0_3 = arith.constant 0 : index
    %c0_4 = arith.constant 0 : index
    %10 = vector.load %arg4[%c0_3, %c0_4] : memref<384x384xbf16, #tpu.memory_space<vmem>>, vector<384x384xbf16>
    %cst_5 = arith.constant dense<0.000000e+00> : vector<64x384xf32>
    %11 = tpu.matmul %6, %10, %cst_5 {dimension_numbers = #tpu.dot_dimension_numbers<[1], [0], [0], [1], [0, 0, 1, 1], [], []>} : vector<64x384xbf16>, vector<384x384xbf16>, vector<64x384xf32> -> vector<64x384xf32>
    %cst_6 = arith.constant dense<0.000000e+00> : vector<64x384xf32>
    %12 = tpu.matmul %9, %10, %cst_6 {dimension_numbers = #tpu.dot_dimension_numbers<[1], [0], [0], [1], [0, 0, 1, 1], [], []>} : vector<64x384xbf16>, vector<384x384xbf16>, vector<64x384xf32> -> vector<64x384xf32>
    %13 = arith.addf %11, %12 : vector<64x384xf32>
    %cst_7 = arith.constant 4.800000e-04 : f32
    %14 = vector.broadcast %cst_7 : f32 to vector<64x384xf32>
    %15 = arith.addf %13, %14 : vector<64x384xf32>
    %16 = math.rsqrt %15 : vector<64x384xf32>
    %17 = arith.mulf %0, %16 : vector<64x384xf32>
    %c0_8 = arith.constant 0 : index
    %c0_9 = arith.constant 0 : index
    %18 = vector.load %arg2[%c0_8, %c0_9] : memref<1x384xf32, #tpu.memory_space<vmem>>, vector<1x384xf32>
    %19 = vector.broadcast %18 : vector<1x384xf32> to vector<64x384xf32>
    %20 = arith.mulf %17, %19 : vector<64x384xf32>
    %c0_10 = arith.constant 0 : index
    %c0_11 = arith.constant 0 : index
    %21 = vector.load %arg5[%c0_10, %c0_11] : memref<64x384xf32, #tpu.memory_space<vmem>>, vector<64x384xf32>
    tpu.vector_store %arg5[%c0_10, %c0_11], %20 {strides = array<i32>} : memref<64x384xf32, #tpu.memory_space<vmem>>, vector<64x384xf32>,
    return
  }
  func.func @transform_0(%arg0: i32) -> (i32, i32) {
    %c0_i32 = arith.constant 0 : i32
    %c0_i32_0 = arith.constant 0 : i32
    return %arg0, %c0_i32 : i32, i32
  }
  func.func @transform_1(%arg0: i32) -> (i32, i32) {
    %c0_i32 = arith.constant 0 : i32
    %c0_i32_0 = arith.constant 0 : i32
    %c0_i32_1 = arith.constant 0 : i32
    return %c0_i32, %c0_i32_0 : i32, i32
  }
  func.func @transform_2(%arg0: i32) -> (i32, i32) {
    %c0_i32 = arith.constant 0 : i32
    %c0_i32_0 = arith.constant 0 : i32
    %c0_i32_1 = arith.constant 0 : i32
    return %c0_i32, %c0_i32_0 : i32, i32
  }
  func.func @transform_3(%arg0: i32) -> (i32, i32) {
    %c0_i32 = arith.constant 0 : i32
    %c0_i32_0 = arith.constant 0 : i32
    %c0_i32_1 = arith.constant 0 : i32
    return %c0_i32, %c0_i32_0 : i32, i32
  }
  func.func @transform_4(%arg0: i32) -> (i32, i32) {
    %c0_i32 = arith.constant 0 : i32
    %c0_i32_0 = arith.constant 0 : i32
    return %arg0, %c0_i32 : i32, i32
  }
}

</mosaic_0001>

<bundles_post_ra>
// kernel: tpu_custom_call.1
= control target key start
LH: loop header
LB: loop body
LE: loop exit
PB: predicated region body
PF: predicated region fallthrough
CT: control target
= control target key end

     0   :  { %9 = vsyncpa [#allocation3], 0  ;;  %s3713_s0 = inlined_call_operand.hbm [shape: f32[64,384], index: 0, kind: input, shape index: {}]   ;;  %s3714_s1 = inlined_call_operand.vmem [shape: f32[1,384], index: 1, kind: input, shape index: {}]   ;;  %s3715_s2 = inlined_call_operand.hbm [shape: bf16[384,384], index: 2, kind: input, shape index: {}]   ;;  %s3716_s3 = inlined_call_operand.hbm [shape: bf16[384,384], index: 3, kind: input, shape index: {}]   ;;  %s3717_s4 = inlined_call_operand.hbm [shape: f32[64,384], index: 4, kind: output, shape index: {}]  }
   0x1   :  { %10 = vsyncpa [#allocation6], 0 }
   0x2   :  { %11 = vsyncpa [#allocation4], 0  ;;  %s3002_s15 = smov [#allocation5]   ;;  %s2908_s19 = scalar_lea.hbm %s3715_s2, 9216 }
   0x3   :  { %s31_s16 = sshll.u32 %s3002_s15, 4  ;;  %p2909_p0 = scmp.ne.s32.totalorder %s3715_s2, %s2908_s19  ;;  %s32_s16 = int_to_ptr.vmem [resolvable:$true] %s31_s16 }
   0x4   :  { %p2912_p1 = scmp.lt.u32.totalorder %s2908_s19, %s3715_s2 }
   0x6   :  { %p2914_p2 = pnand %p2912_p1, %p2909_p0 }
   0x8   :  { %2917 = shalt.err (!%p2914_p2)
}
   0x9   :  { %s2918_s24 = scalar_lea.vmem %s32_s16, 9216  ;;  %p2923_p4 = scmp.lt.s32.totalorder %s32_s16, %s32_s16 }
   0xa   :  { %p2919_p3 = scmp.ne.s32.totalorder %s32_s16, %s2918_s24  ;;  %p2924_p5 = scmp.lt.s32.totalorder %s2918_s24, %s2918_s24 }
   0xc   :  { %p2925_p6 = por %p2924_p5, %p2923_p4 }
   0xe   :  { %p2926_p7 = pnand %p2925_p6, %p2919_p3 }
  0x10   :  { %2929 = shalt.err (!%p2926_p7)
}
  0x11   :  { %s3003_s25 = smov 192   ;;  %s3004_s26 = smov 12  }
  0x12   :  { %37 = dma.hbm_to_vmem [thread:$0]  %s3715_s2, 9216, %s32_s16, [#allocation6], %s3003_s25, %s3003_s25, %s3004_s26  }
  0x13   :  { %s3005_s29 = smov [#allocation2]   ;;  %s2930_s7 = scalar_lea.hbm %s3713_s0, 3072 }
  0x14   :  { %s17_s30 = sshll.u32 %s3005_s29, 4  ;;  %p2931_p8 = scmp.ne.s32.totalorder %s3713_s0, %s2930_s7  ;;  %s18_s30 = int_to_ptr.vmem [resolvable:$true] %s17_s30 }
  0x15   :  { %p2934_p9 = scmp.lt.u32.totalorder %s2930_s7, %s3713_s0 }
  0x17   :  { %p2936_p10 = pnand %p2934_p9, %p2931_p8 }
  0x19   :  { %2939 = shalt.err (!%p2936_p10)
}
  0x1a   :  { %s2940_s12 = scalar_lea.vmem %s18_s30, 3072  ;;  %p2945_p12 = scmp.lt.s32.totalorder %s18_s30, %s18_s30 }
  0x1b   :  { %p2941_p11 = scmp.ne.s32.totalorder %s18_s30, %s2940_s12  ;;  %p2946_p13 = scmp.lt.s32.totalorder %s2940_s12, %s2940_s12 }
  0x1d   :  { %p2947_p0 = por %p2946_p13, %p2945_p12 }
  0x1f   :  { %p2948_p1 = pnand %p2947_p0, %p2941_p11 }
  0x21   :  { %2951 = shalt.err (!%p2948_p1)
}
  0x22   :  { %s3006_s2 = smov 384   ;;  %s3007_s13 = smov 24  }
  0x23   :  { %23 = dma.hbm_to_vmem [thread:$0]  %s3713_s0, 3072, %s18_s30, [#allocation3], %s3006_s2, %s3006_s2, %s3007_s13  }
  0x24   :  { %s3008_s16 = smov [#allocation7]   ;;  %s2952_s20 = scalar_lea.hbm %s3716_s3, 9216 }
  0x25   :  { %s43_s17 = sshll.u32 %s3008_s16, 4  ;;  %p2953_p2 = scmp.ne.s32.totalorder %s3716_s3, %s2952_s20  ;;  %s44_s17 = int_to_ptr.vmem [resolvable:$true] %s43_s17 }
  0x26   :  { %p2956_p3 = scmp.lt.u32.totalorder %s2952_s20, %s3716_s3 }
  0x28   :  { %p2958_p4 = pnand %p2956_p3, %p2953_p2 }
  0x2a   :  { %2961 = shalt.err (!%p2958_p4)
}
  0x2b   :  { %s2962_s27 = scalar_lea.vmem %s44_s17, 9216  ;;  %p2967_p6 = scmp.lt.s32.totalorder %s44_s17, %s44_s17 }
  0x2c   :  { %p2963_p5 = scmp.ne.s32.totalorder %s44_s17, %s2962_s27  ;;  %p2968_p7 = scmp.lt.s32.totalorder %s2962_s27, %s2962_s27 }
  0x2e   :  { %p2969_p8 = por %p2968_p7, %p2967_p6 }
  0x30   :  { %p2970_p9 = pnand %p2969_p8, %p2963_p5 }
  0x32   :  { %2973 = shalt.err (!%p2970_p9)
}
  0x33   :  { %49 = dma.hbm_to_vmem [thread:$0]  %s3716_s3, 9216, %s44_s17, [#allocation6], %s3003_s25, %s3003_s25, %s3004_s26  }
  0x34   :  { %2996 = dma.done.wait [#allocation3], 3072  }
  0x35   :  { %2997 = vsyncadd [#allocation3], 4294964224 }
  0x36   :  { %2998 = dma.done.wait [#allocation6], 18432  }
  0x37   :  { %2999 = vsyncadd [#allocation6], 4294948864  ;;  %v2644_v0 = vld [vmem:[#allocation5 + $0x4] ss:$12 sps:$4 sm:$0xff]   ;;  %v2646_v1 = vld [vmem:[#allocation5] ss:$12 sps:$4 sm:$0xff]  }
  0x38   :  { %576 = vmatprep.subr.bf16.mxu0 %v2644_v0  ;;  %v2647_v2 = vld [vmem:[#allocation5 + $0x1c] ss:$12 sps:$4 sm:$0xff]   ;;  %v2649_v3 = vld [vmem:[#allocation5 + $0x18] ss:$12 sps:$4 sm:$0xff]   ;;  %v2650_v4 = vld [vmem:[#allocation5 + $0x34] ss:$12 sps:$4 sm:$0xff]  }
  0x39   :  { %577 = vmatpush1.bf16.msra.mxu0 %v2646_v1  ;;  %v2652_v5 = vld [vmem:[#allocation5 + $0x30] ss:$12 sps:$4 sm:$0xff]   ;;  %v2653_v6 = vld [vmem:[#allocation5 + $0x4c] ss:$12 sps:$4 sm:$0xff]   ;;  %v2655_v7 = vld [vmem:[#allocation5 + $0x48] ss:$12 sps:$4 sm:$0xff]  }
  0x3a   :  { %578 = vmatprep.subr.bf16.mxu0 %v2647_v2  ;;  %v2656_v8 = vld [vmem:[#allocation5 + $0x64] ss:$12 sps:$4 sm:$0xff]   ;;  %v2658_v9 = vld [vmem:[#allocation5 + $0x60] ss:$12 sps:$4 sm:$0xff]   ;;  %v2659_v10 = vld [vmem:[#allocation5 + $0x7c] ss:$12 sps:$4 sm:$0xff]  }
  0x3b   :  { %v2661_v11 = vld [vmem:[#allocation5 + $0x78] ss:$12 sps:$4 sm:$0xff]   ;;  %v2662_v12 = vld [vmem:[#allocation5 + $0x94] ss:$12 sps:$4 sm:$0xff]   ;;  %v3081_v13 = vld [vmem:[#allocation2 + $0x8] sm:$0xff] }
  0x3c   :  { %v3083_v14 = vld [vmem:[#allocation2 + $0x20] sm:$0xff]  ;;  %v2664_v16 = vld [vmem:[#allocation5 + $0x90] ss:$12 sps:$4 sm:$0xff]   ;;  %v2665_v17 = vld [vmem:[#allocation5 + $0xac] ss:$12 sps:$4 sm:$0xff]  }
  0x3d   :  { %579 = vmatpush1.bf16.msra.mxu0 %v2649_v3  ;;  %v3087_v15 = vpack.c.bf16 %v3083_v14, %v3081_v13  ;;  %v2667_v18 = vld [vmem:[#allocation5 + $0xa8] ss:$12 sps:$4 sm:$0xff]   ;;  %v2668_v19 = vld [vmem:[#allocation5 + $0xc4] ss:$12 sps:$4 sm:$0xff]   ;;  %v2670_v20 = vld [vmem:[#allocation5 + $0xc0] ss:$12 sps:$4 sm:$0xff]  }
  0x3e   :  { %580 = vmatprep.subr.bf16.mxu0 %v2650_v4  ;;  %v2671_v21 = vld [vmem:[#allocation5 + $0xdc] ss:$12 sps:$4 sm:$0xff]   ;;  %v2673_v22 = vld [vmem:[#allocation5 + $0xd8] ss:$12 sps:$4 sm:$0xff]   ;;  %v2674_v23 = vld [vmem:[#allocation5 + $0xf4] ss:$12 sps:$4 sm:$0xff]  }
  0x3f   :  { %608 = vmatprep.mubr.bf16.mxu0 %v3087_v15  ;;  %v2716_v24 = vld [vmem:[#allocation5 + $0x188] ss:$12 sps:$4 sm:$0xff]   ;;  %v2676_v27 = vld [vmem:[#allocation5 + $0xf0] ss:$12 sps:$4 sm:$0xff]   ;;  %v2677_v29 = vld [vmem:[#allocation5 + $0x10c] ss:$12 sps:$4 sm:$0xff]  }
  0x40   :  { %v62_v25 = vld [vmem:[#allocation2 + $0x10] sm:$0xff]  ;;  %v65_v26 = vld [vmem:[#allocation2 + $0x28] sm:$0xff]  ;;  %2459 = vmatprep.subr.bf16.mxu1 %v2716_v24  ;;  %v2722_v33 = vld [vmem:[#allocation5 + $0x1b8] ss:$12 sps:$4 sm:$0xff]  }
  0x41   :  { %581 = vmatpush1.bf16.msra.mxu0 %v2652_v5  ;;  %v3090_v28 = vpack.c.bf16 %v65_v26, %v62_v25  ;;  %2460 = vmatpush3.bf16.msra.mxu1 %v2716_v24  ;;  %v2719_v30 = vld [vmem:[#allocation5 + $0x1a0] ss:$12 sps:$4 sm:$0xff]   ;;  %v2679_v31 = vld [vmem:[#allocation5 + $0x108] ss:$12 sps:$4 sm:$0xff]   ;;  %v2680_v32 = vld [vmem:[#allocation5 + $0x124] ss:$12 sps:$4 sm:$0xff]  }
  0x42   :  { %582 = vmatprep.subr.bf16.mxu0 %v2653_v6  ;;  %2461 = vmatprep.subr.bf16.mxu1 %v2719_v30  ;;  %v2682_v34 = vld [vmem:[#allocation5 + $0x120] ss:$12 sps:$4 sm:$0xff]   ;;  %v2683_v35 = vld [vmem:[#allocation5 + $0x13c] ss:$12 sps:$4 sm:$0xff]   ;;  %v2685_v37 = vld [vmem:[#allocation5 + $0x138] ss:$12 sps:$4 sm:$0xff]  }
  0x43   :  { %2475 = vmatprep.mubr.bf16.mxu1 %v3090_v28  ;;  %v2725_v36 = vld [vmem:[#allocation5 + $0x1d0] ss:$12 sps:$4 sm:$0xff]   ;;  %v2728_v38 = vld [vmem:[#allocation5 + $0x1e8] ss:$12 sps:$4 sm:$0xff]   ;;  %v2731_v41 = vld [vmem:[#allocation5 + $0x200] ss:$12 sps:$4 sm:$0xff]  }
  0x44   :  { %v2686_v39 = vld [vmem:[#allocation5 + $0x154] ss:$12 sps:$4 sm:$0xff]   ;;  %v2688_v40 = vld [vmem:[#allocation5 + $0x150] ss:$12 sps:$4 sm:$0xff]   ;;  %v2689_v42 = vld [vmem:[#allocation5 + $0x16c] ss:$12 sps:$4 sm:$0xff]  }
  0x45   :  { %583 = vmatpush1.bf16.msra.mxu0 %v2655_v7  ;;  %2462 = vmatpush3.bf16.msra.mxu1 %v2719_v30  ;;  %v2691_v43 = vld [vmem:[#allocation5 + $0x168] ss:$12 sps:$4 sm:$0xff]   ;;  %v3093_v44 = vld [vmem:[#allocation2] sm:$0xff]  ;;  %v3095_v45 = vld [vmem:[#allocation2 + $0x18] sm:$0xff] }
  0x46   :  { %584 = vmatprep.subr.bf16.mxu0 %v2656_v8  ;;  %2463 = vmatprep.subr.bf16.mxu1 %v2722_v33  ;;  %v2694_v46 = vld [vmem:[#allocation5 + $0x184] ss:$12 sps:$4 sm:$0xff]   ;;  %v3097_v48 = vld [vmem:[#allocation2 + $0x38] sm:$0xff]  ;;  %v3103_v50 = vpack.c.bf16 %v3095_v45, %v3093_v44  ;;  %v2692_v52 = vld [vmem:[#allocation5 + $0x180] ss:$12 sps:$4 sm:$0xff]  }
  0x47   :  { %v2734_v47 = vld [vmem:[#allocation5 + $0x218] ss:$12 sps:$4 sm:$0xff]   ;;  %v3099_v49 = vld [vmem:[#allocation2 + $0x50] sm:$0xff]  ;;  %v2697_v54 = vld [vmem:[#allocation5 + $0x19c] ss:$12 sps:$4 sm:$0xff]  }
  0x48   :  { %v2737_v51 = vld [vmem:[#allocation5 + $0x230] ss:$12 sps:$4 sm:$0xff]   ;;  %v3107_v53 = vpack.c.bf16 %v3099_v49, %v3097_v48  ;;  %v2695_v55 = vld [vmem:[#allocation5 + $0x198] ss:$12 sps:$4 sm:$0xff]   ;;  %v3111_v57 = vld [vmem:[#allocation2 + $0x48] sm:$0xff] }
  0x49   :  { %585 = vmatpush1.bf16.msra.mxu0 %v2658_v9  ;;  %2464 = vmatpush3.bf16.msra.mxu1 %v2722_v33  ;;  %v3109_v56 = vld [vmem:[#allocation2 + $0x30] sm:$0xff]  ;;  %v3114_v59 = vld [vmem:[#allocation2 + $0x68] sm:$0xff]  ;;  %v3116_v60 = vld [vmem:[#allocation2 + $0x80] sm:$0xff] }
  0x4a   :  { %586 = vmatprep.subr.bf16.mxu0 %v2659_v10  ;;  %2465 = vmatprep.subr.bf16.mxu1 %v2725_v36  ;;  %v2700_v58 = vld [vmem:[#allocation5 + $0x1b4] ss:$12 sps:$4 sm:$0xff]   ;;  %v3120_v62 = vld [vmem:[#allocation7 + $0x4] ss:$12 sps:$4 sm:$0xff]   ;;  %v3123_v63 = vld [vmem:[#allocation2 + $0x58] sm:$0xff]  ;;  %v3133_v3 = vpack.c.bf16 %v3111_v57, %v3109_v56  ;;  %v3144_v7 = vpack.c.bf16 %v3116_v60, %v3114_v59 }
  0x4b   :  { %v3118_v61 = vld [vmem:[#allocation2 + $0x40] sm:$0xff]  ;;  %v3125_v0 = vld [vmem:[#allocation2 + $0x70] sm:$0xff]  ;;  %v3127_v1 = vld [vmem:[#allocation2 + $0x88] sm:$0xff] }
  0x4c   :  { %v3129_v2 = vld [vmem:[#allocation7] ss:$12 sps:$4 sm:$0xff]   ;;  %v3137_v4 = vpack.c.bf16 %v3123_v63, %v3118_v61  ;;  %v3140_v5 = vld [vmem:[#allocation7 + $0x1c] ss:$12 sps:$4 sm:$0xff]   ;;  %v3148_v8 = vpack.c.bf16 %v3127_v1, %v3125_v0  ;;  %v3195_v33 = vld [vmem:[#allocation2 + $0x90] sm:$0xff] }
  0x4d   :  { %587 = vmatpush1.bf16.msra.mxu0 %v2661_v11  ;;  %2466 = vmatpush3.bf16.msra.mxu1 %v2725_v36  ;;  %v2698_v6 = vld [vmem:[#allocation5 + $0x1b0] ss:$12 sps:$4 sm:$0xff]   ;;  %v2703_v9 = vld [vmem:[#allocation5 + $0x1cc] ss:$12 sps:$4 sm:$0xff]   ;;  %v2701_v10 = vld [vmem:[#allocation5 + $0x1c8] ss:$12 sps:$4 sm:$0xff]  }
  0x4e   :  { %588 = vmatprep.subr.bf16.mxu0 %v2662_v12  ;;  %2467 = vmatprep.subr.bf16.mxu1 %v2728_v38  ;;  %v3151_v11 = vld [vmem:[#allocation2 + $0x60] sm:$0xff]  ;;  %v3153_v12 = vld [vmem:[#allocation2 + $0x78] sm:$0xff] }
  0x4f   :  { %v3177_v24 = vpack.c.bf16 %v3153_v12, %v3151_v11  ;;  %v3184_v26 = vld [vmem:[#allocation7 + $0x4c] ss:$12 sps:$4 sm:$0xff]   ;;  %v2709_v30 = vld [vmem:[#allocation5 + $0x1fc] ss:$12 sps:$4 sm:$0xff]   ;;  %v2712_v36 = vld [vmem:[#allocation5 + $0x214] ss:$12 sps:$4 sm:$0xff]  }
  0x51   :  { %589 = vmatpush1.bf16.msra.mxu0 %v2664_v16  ;;  %2468 = vmatpush3.bf16.msra.mxu1 %v2728_v38  ;;  %v3157_v16 = vld [vmem:[#allocation7 + $0x18] ss:$12 sps:$4 sm:$0xff]   ;;  %v3204_v38 = vld [vmem:[#allocation7 + $0x60] ss:$12 sps:$4 sm:$0xff]  }
  0x52   :  { %590 = vmatprep.subr.bf16.mxu0 %v2665_v17  ;;  %2469 = vmatprep.subr.bf16.mxu1 %v2731_v41  ;;  %v2706_v17 = vld [vmem:[#allocation5 + $0x1e4] ss:$12 sps:$4 sm:$0xff]   ;;  %3770 = vst [vmem:[#allocation13_spill] sm:$0xff] %v3204_v38 }
  0x55   :  { %591 = vmatpush1.bf16.msra.mxu0 %v2667_v18  ;;  %2470 = vmatpush3.bf16.msra.mxu1 %v2731_v41  ;;  %v3160_v18 = vld [vmem:[#allocation2 + $0x98] sm:$0xff] }
  0x56   :  { %592 = vmatprep.subr.bf16.mxu0 %v2668_v19  ;;  %2471 = vmatprep.subr.bf16.mxu1 %v2734_v47  ;;  %v3163_v19 = vld [vmem:[#allocation7 + $0x34] ss:$12 sps:$4 sm:$0xff]   ;;  %v3211_v41 = vld [vmem:[#allocation7 + $0x7c] ss:$12 sps:$4 sm:$0xff]  }
  0x57   :  { %3771 = vst [vmem:[#allocation14_spill] sm:$0xff] %v3211_v41 }
  0x59   :  { %593 = vmatpush1.bf16.msra.mxu0 %v2670_v20  ;;  %2472 = vmatpush3.bf16.msra.mxu1 %v2734_v47  ;;  %v3166_v20 = vld [vmem:[#allocation2 + $0xa0] sm:$0xff]  ;;  %v2717_v47 = vld [vmem:[#allocation5 + $0xc8] ss:$12 sps:$4 sm:$0xff]  }
  0x5a   :  { %594 = vmatprep.subr.bf16.mxu0 %v2671_v21  ;;  %2473 = vmatprep.subr.bf16.mxu1 %v2737_v51  ;;  %v3168_v21 = vld [vmem:[#allocation2 + $0xb8] sm:$0xff] }
  0x5b   :  { %v3181_v25 = vpack.c.bf16 %v3168_v21, %v3166_v20 }
  0x5d   :  { %595 = vmatpush1.bf16.msra.mxu0 %v2673_v22  ;;  %2474 = vmatpush3.bf16.msra.mxu1 %v2737_v51  ;;  %v3170_v22 = vld [vmem:[#allocation2 + $0xb0] sm:$0xff]  ;;  %v3718_v51 = vmov 0  }
  0x5e   :  { %596 = vmatprep.subr.bf16.mxu0 %v2674_v23  ;;  %1452 = vmatprep.subr.bf16.mxu1 %v3120_v62  ;;  %v3173_v23 = vld [vmem:[#allocation7 + $0x30] ss:$12 sps:$4 sm:$0xff]  }
  0x60   :  { %2476 = vmatmul.mubr.bf16.vlgmr.msra.gmra.mrb[0].mxu1 %v3137_v4 }
  0x61   :  { %597 = vmatpush1.bf16.msra.mxu0 %v2676_v27  ;;  %2479 = vmatprep.mubr.bf16.mxu1 %v3148_v8  ;;  %v2704_v27 = vld [vmem:[#allocation5 + $0x1e0] ss:$12 sps:$4 sm:$0xff]  }
  0x62   :  { %598 = vmatprep.subr.bf16.mxu0 %v2677_v29  ;;  %1453 = vmatpush1.bf16.msra.mxu1 %v3129_v2  ;;  %v3188_v29 = vpack.c.bf16 %v3170_v22, %v3160_v18 }
  0x63   :  { %1454 = vmatprep.subr.bf16.mxu1 %v3140_v5 }
  0x65   :  { %599 = vmatpush1.bf16.msra.mxu0 %v2679_v31  ;;  %v2707_v31 = vld [vmem:[#allocation5 + $0x1f8] ss:$12 sps:$4 sm:$0xff]  }
  0x66   :  { %600 = vmatprep.subr.bf16.mxu0 %v2680_v32  ;;  %1455 = vmatpush1.bf16.msra.mxu1 %v3157_v16  ;;  %v3192_v32 = vld [vmem:[#allocation7 + $0x48] ss:$12 sps:$4 sm:$0xff]  }
  0x67   :  { %1456 = vmatprep.subr.bf16.mxu1 %v3163_v19 }
  0x68   :  { %2480 = vmatmul.mubr.bf16.gmra.mrb[4].mxu1 %v3181_v25 }
  0x69   :  { %601 = vmatpush1.bf16.msra.mxu0 %v2682_v34  ;;  %v3198_v34 = vld [vmem:[#allocation7 + $0x64] ss:$12 sps:$4 sm:$0xff]  }
  0x6a   :  { %602 = vmatprep.subr.bf16.mxu0 %v2683_v35  ;;  %1457 = vmatpush1.bf16.msra.mxu1 %v3173_v23  ;;  %3769 = vst [vmem:[#allocation12_spill] sm:$0xff] %v3198_v34  ;;  %v3201_v35 = vld [vmem:[#allocation2 + $0xa8] sm:$0xff] }
  0x6b   :  { %1458 = vmatprep.subr.bf16.mxu1 %v3184_v26 }
  0x6d   :  { %603 = vmatpush1.bf16.msra.mxu0 %v2685_v37  ;;  %v2710_v37 = vld [vmem:[#allocation5 + $0x210] ss:$12 sps:$4 sm:$0xff]  }
  0x6e   :  { %604 = vmatprep.subr.bf16.mxu0 %v2686_v39  ;;  %1459 = vmatpush1.bf16.msra.mxu1 %v3192_v32  ;;  %v3208_v39 = vpack.c.bf16 %v3201_v35, %v3195_v33 }
  0x6f   :  { %1460 = vmatprep.subr.bf16.mxu1 %v3198_v34 }
  0x71   :  { %605 = vmatpush1.bf16.msra.mxu0 %v2688_v40  ;;  %v2715_v40 = vld [vmem:[#allocation5 + $0x22c] ss:$12 sps:$4 sm:$0xff]  }
  0x72   :  { %606 = vmatprep.subr.bf16.mxu0 %v2689_v42  ;;  %v3213_v42 = vld [vmem:[#allocation7 + $0x78] ss:$12 sps:$4 sm:$0xff]   ;;  %1461 = vmatpush1.bf16.msra.mxu1 %v3204_v38 }
  0x73   :  { %3772 = vst [vmem:[#allocation15_spill] sm:$0xff] %v3213_v42  ;;  %1462 = vmatprep.subr.bf16.mxu1 %v3211_v41 }
  0x75   :  { %607 = vmatpush1.bf16.msra.mxu0 %v2691_v43  ;;  %v3215_v43 = vld [vmem:[#allocation7 + $0x94] ss:$12 sps:$4 sm:$0xff]  }
  0x76   :  { %649 = vmatprep.subr.bf16.mxu0 %v2694_v46  ;;  %3773 = vst [vmem:[#allocation16_spill] sm:$0xff] %v3215_v43  ;;  %v2713_v46 = vld [vmem:[#allocation5 + $0x228] ss:$12 sps:$4 sm:$0xff]   ;;  %1463 = vmatpush1.bf16.msra.mxu1 %v3213_v42 }
  0x77   :  { %1464 = vmatprep.subr.bf16.mxu1 %v3215_v43 }
  0x78   :  { %609 = vmatmul.mubr.bf16.vlgmr.msra.gmra.mrb[0].mxu0 %v3103_v50 }
  0x79   :  { %650 = vmatpush1.bf16.msra.mxu0 %v2692_v52  ;;  %618 = vmatprep.mubr.bf16.mxu0 %v3107_v53  ;;  %v3221_v52 = vld [vmem:[#allocation7 + $0x90] ss:$12 sps:$4 sm:$0xff]  }
  0x7a   :  { %651 = vmatprep.subr.bf16.mxu0 %v2697_v54  ;;  %3774 = vst [vmem:[#allocation17_spill] sm:$0xff] %v3221_v52  ;;  %v3223_v54 = vld [vmem:[#allocation7 + $0xac] ss:$12 sps:$4 sm:$0xff]   ;;  %1465 = vmatpush1.bf16.msra.mxu1 %v3221_v52 }
  0x7b   :  { %3775 = vst [vmem:[#allocation18_spill] sm:$0xff] %v3223_v54  ;;  %1466 = vmatprep.subr.bf16.mxu1 %v3223_v54 }
  0x7d   :  { %652 = vmatpush1.bf16.msra.mxu0 %v2695_v55  ;;  %v2718_v55 = vld [vmem:[#allocation5 + $0x8] ss:$12 sps:$4 sm:$0xff]  }
  0x7e   :  { %653 = vmatprep.subr.bf16.mxu0 %v2700_v58  ;;  %v2720_v58 = vld [vmem:[#allocation5 + $0xe0] ss:$12 sps:$4 sm:$0xff]  }
  0x80   :  { %619 = vmatmul.mubr.bf16.gmra.mrb[4].mxu0 %v3133_v3 }
  0x81   :  { %654 = vmatpush1.bf16.msra.mxu0 %v2698_v6  ;;  %628 = vmatprep.mubr.bf16.mxu0 %v3144_v7  ;;  %v3227_v6 = vld [vmem:[#allocation7 + $0xa8] ss:$12 sps:$4 sm:$0xff]  }
  0x82   :  { %655 = vmatprep.subr.bf16.mxu0 %v2703_v9  ;;  %3776 = vst [vmem:[#allocation19_spill] sm:$0xff] %v3227_v6  ;;  %v3229_v9 = vld [vmem:[#allocation7 + $0xc4] ss:$12 sps:$4 sm:$0xff]   ;;  %1467 = vmatpush1.bf16.msra.mxu1 %v3227_v6 }
  0x83   :  { %3777 = vst [vmem:[#allocation20_spill] sm:$0xff] %v3229_v9  ;;  %1468 = vmatprep.subr.bf16.mxu1 %v3229_v9 }
  0x85   :  { %656 = vmatpush1.bf16.msra.mxu0 %v2701_v10  ;;  %v2721_v10 = vld [vmem:[#allocation5 + $0x20] ss:$12 sps:$4 sm:$0xff]  }
  0x86   :  { %657 = vmatprep.subr.bf16.mxu0 %v2706_v17  ;;  %v2723_v17 = vld [vmem:[#allocation5 + $0xf8] ss:$12 sps:$4 sm:$0xff]  }
  0x88   :  { %629 = vmatmul.mubr.bf16.gmra.mrb[8].mxu0 %v3177_v24 }
  0x89   :  { %658 = vmatpush1.bf16.msra.mxu0 %v2704_v27  ;;  %638 = vmatprep.mubr.bf16.mxu0 %v3188_v29  ;;  %v3235_v27 = vld [vmem:[#allocation7 + $0xc0] ss:$12 sps:$4 sm:$0xff]  }
  0x8a   :  { %659 = vmatprep.subr.bf16.mxu0 %v2709_v30  ;;  %3778 = vst [vmem:[#allocation21_spill] sm:$0xff] %v3235_v27  ;;  %v3237_v30 = vld [vmem:[#allocation7 + $0xdc] ss:$12 sps:$4 sm:$0xff]   ;;  %1469 = vmatpush1.bf16.msra.mxu1 %v3235_v27 }
  0x8b   :  { %3779 = vst [vmem:[#allocation22_spill] sm:$0xff] %v3237_v30  ;;  %1470 = vmatprep.subr.bf16.mxu1 %v3237_v30 }
  0x8d   :  { %660 = vmatpush1.bf16.msra.mxu0 %v2707_v31  ;;  %v2724_v31 = vld [vmem:[#allocation5 + $0x38] ss:$12 sps:$4 sm:$0xff]  }
  0x8e   :  { %661 = vmatprep.subr.bf16.mxu0 %v2712_v36  ;;  %v2726_v36 = vld [vmem:[#allocation5 + $0x110] ss:$12 sps:$4 sm:$0xff]  }
  0x90   :  { %639 = vmatmul.mubr.bf16.gmra.mrb[12].mxu0 %v3208_v39 }
  0x91   :  { %662 = vmatpush1.bf16.msra.mxu0 %v2710_v37  ;;  %681 = vmatprep.mubr.bf16.mxu0 %v3718_v51  ;;  %v3241_v37 = vld [vmem:[#allocation7 + $0xd8] ss:$12 sps:$4 sm:$0xff]  }
  0x92   :  { %663 = vmatprep.subr.bf16.mxu0 %v2715_v40  ;;  %3780 = vst [vmem:[#allocation23_spill] sm:$0xff] %v3241_v37  ;;  %v2727_v40 = vld [vmem:[#allocation5 + $0x50] ss:$12 sps:$4 sm:$0xff]   ;;  %1471 = vmatpush1.bf16.msra.mxu1 %v3241_v37 }
  0x95   :  { %664 = vmatpush1.bf16.msra.mxu0 %v2713_v46  ;;  %v2729_v46 = vld [vmem:[#allocation5 + $0x128] ss:$12 sps:$4 sm:$0xff]  }
  0x96   :  { %2303 = vmatprep.subr.bf16.mxu0 %v2717_v47  ;;  %v3250_v47 = vld [vmem:[#allocation7 + $0xf0] ss:$12 sps:$4 sm:$0xff]  }
  0x97   :  { %3782 = vst [vmem:[#allocation25_spill] sm:$0xff] %v3250_v47 }
  0x98   :  { %682 = vmatmul.mubr.bf16.vlgmr.msra.gmra.mrb[0].mxu0 %v3090_v28  ;;  %v3246_v28 = vld [vmem:[#allocation7 + $0xf4] ss:$12 sps:$4 sm:$0xff]  }
  0x99   :  { %2304 = vmatpush3.bf16.msra.mxu0 %v2718_v55  ;;  %691 = vmatprep.mubr.bf16.mxu0 %v3718_v51  ;;  %3781 = vst [vmem:[#allocation24_spill] sm:$0xff] %v3246_v28  ;;  %v3253_v55 = vld [vmem:[#allocation7 + $0x10c] ss:$12 sps:$4 sm:$0xff]  }
  0x9a   :  { %2305 = vmatprep.subr.bf16.mxu0 %v2720_v58  ;;  %1472 = vmatprep.subr.bf16.mxu1 %v3246_v28  ;;  %3783 = vst [vmem:[#allocation26_spill] sm:$0xff] %v3253_v55  ;;  %v2732_v58 = vld [vmem:[#allocation5 + $0x140] ss:$12 sps:$4 sm:$0xff]  }
  0x9b   :  { %1473 = vmatpush1.bf16.msra.mxu1 %v3250_v47 }
  0x9c   :  { %1474 = vmatprep.subr.bf16.mxu1 %v3253_v55  ;;  %v3337_v55 = vld [vmem:[#allocation7 + $0xb0] ss:$12 sps:$4 sm:$0xff]  }
  0x9d   :  { %2306 = vmatpush3.bf16.msra.mxu0 %v2721_v10  ;;  %v3256_v10 = vld [vmem:[#allocation7 + $0x108] ss:$12 sps:$4 sm:$0xff]   ;;  %3805 = vst [vmem:[#allocation48_spill] sm:$0xff] %v3337_v55 }
  0x9e   :  { %2307 = vmatprep.subr.bf16.mxu0 %v2723_v17  ;;  %3784 = vst [vmem:[#allocation27_spill] sm:$0xff] %v3256_v10  ;;  %v2733_v17 = vld [vmem:[#allocation5 + $0x80] ss:$12 sps:$4 sm:$0xff]  }
  0x9f   :  { %1475 = vmatpush1.bf16.msra.mxu1 %v3256_v10  ;;  %v3335_v10 = vld [vmem:[#allocation7 + $0x168] ss:$12 sps:$4 sm:$0xff]  }
  0xa0   :  { %692 = vmatmul.mubr.bf16.gmra.mrb[4].mxu0 %v3137_v4  ;;  %v2730_v4 = vld [vmem:[#allocation5 + $0x68] ss:$12 sps:$4 sm:$0xff]   ;;  %3804 = vst [vmem:[#allocation47_spill] sm:$0xff] %v3335_v10 }
  0xa1   :  { %2308 = vmatpush3.bf16.msra.mxu0 %v2724_v31  ;;  %701 = vmatprep.mubr.bf16.mxu0 %v3718_v51  ;;  %v2735_v31 = vld [vmem:[#allocation5 + $0x158] ss:$12 sps:$4 sm:$0xff]  }
  0xa2   :  { %2309 = vmatprep.subr.bf16.mxu0 %v2726_v36  ;;  %v2736_v36 = vld [vmem:[#allocation5 + $0x98] ss:$12 sps:$4 sm:$0xff]  }
  0xa5   :  { %2310 = vmatpush3.bf16.msra.mxu0 %v2727_v40  ;;  %v2738_v40 = vld [vmem:[#allocation5 + $0x170] ss:$12 sps:$4 sm:$0xff]  }
  0xa6   :  { %2311 = vmatprep.subr.bf16.mxu0 %v2729_v46  ;;  %v2739_v46 = vld [vmem:[#allocation5 + $0xb0] ss:$12 sps:$4 sm:$0xff]  }
  0xa8   :  { %702 = vmatmul.mubr.bf16.gmra.mrb[8].mxu0 %v3148_v8  ;;  %v3264_v8 = vld [vmem:[#allocation7 + $0xc8] ss:$12 sps:$4 sm:$0xff]  }
  0xa9   :  { %2312 = vmatpush3.bf16.msra.mxu0 %v2730_v4  ;;  %711 = vmatprep.mubr.bf16.mxu0 %v3718_v51  ;;  %v3266_v4 = vld [vmem:[#allocation7 + $0x8] ss:$12 sps:$4 sm:$0xff]   ;;  %v3321_v51 = vld [vmem:[#allocation7 + $0x158] ss:$12 sps:$4 sm:$0xff]  }
  0xaa   :  { %2313 = vmatprep.subr.bf16.mxu0 %v2732_v58  ;;  %v3269_v58 = vld [vmem:[#allocation7 + $0xe0] ss:$12 sps:$4 sm:$0xff]   ;;  %3799 = vst [vmem:[#allocation42_spill] sm:$0xff] %v3321_v51 }
  0xad   :  { %2314 = vmatpush3.bf16.msra.mxu0 %v2733_v17  ;;  %v3280_v17 = vld [vmem:[#allocation7 + $0x38] ss:$12 sps:$4 sm:$0xff]  }
  0xae   :  { %2315 = vmatprep.subr.bf16.mxu0 %v2735_v31  ;;  %3787 = vst [vmem:[#allocation30_spill] sm:$0xff] %v3280_v17  ;;  %v3283_v31 = vld [vmem:[#allocation7 + $0x110] ss:$12 sps:$4 sm:$0xff]  }
  0xaf   :  { %3788 = vst [vmem:[#allocation31_spill] sm:$0xff] %v3283_v31 }
  0xb0   :  { %712 = vmatmul.mubr.bf16.gmra.mrb[12].mxu0 %v3181_v25  ;;  %v3274_v25 = vld [vmem:[#allocation7 + $0x20] ss:$12 sps:$4 sm:$0xff]  }
  0xb1   :  { %2316 = vmatpush3.bf16.msra.mxu0 %v2736_v36  ;;  %754 = vmatprep.mubr.bf16.mxu0 %v3087_v15  ;;  %3785 = vst [vmem:[#allocation28_spill] sm:$0xff] %v3274_v25  ;;  %v3277_v15 = vld [vmem:[#allocation7 + $0xf8] ss:$12 sps:$4 sm:$0xff]   ;;  %v3297_v36 = vld [vmem:[#allocation7 + $0x128] ss:$12 sps:$4 sm:$0xff]  }
  0xb2   :  { %2317 = vmatprep.subr.bf16.mxu0 %v2738_v40  ;;  %3786 = vst [vmem:[#allocation29_spill] sm:$0xff] %v3277_v15  ;;  %3791 = vst [vmem:[#allocation34_spill] sm:$0xff] %v3297_v36  ;;  %v3313_v40 = vld [vmem:[#allocation7 + $0x80] ss:$12 sps:$4 sm:$0xff]  }
  0xb3   :  { %3797 = vst [vmem:[#allocation40_spill] sm:$0xff] %v3313_v40 }
  0xb5   :  { %2318 = vmatpush3.bf16.msra.mxu0 %v2739_v46  ;;  %v3319_v46 = vld [vmem:[#allocation7 + $0x154] ss:$12 sps:$4 sm:$0xff]  }
  0xb6   :  { %2355 = vmatprep.subr.bf16.mxu0 %v3264_v8  ;;  %3798 = vst [vmem:[#allocation41_spill] sm:$0xff] %v3319_v46 }
  0xb8   :  { %755 = vmatmul.mubr.bf16.vlgmr.msra.gmra.mrb[16].mxu0 %v3103_v50  ;;  %v3288_v50 = vld [vmem:[#allocation7 + $0x50] ss:$12 sps:$4 sm:$0xff]  }
  0xb9   :  { %762 = vmatprep.mubr.bf16.mxu0 %v3107_v53  ;;  %2356 = vmatpush3.bf16.msra.mxu0 %v3266_v4  ;;  %3789 = vst [vmem:[#allocation32_spill] sm:$0xff] %v3288_v50  ;;  %v3295_v53 = vld [vmem:[#allocation7 + $0x124] ss:$12 sps:$4 sm:$0xff]  }
  0xba   :  { %2357 = vmatprep.subr.bf16.mxu0 %v3269_v58  ;;  %3790 = vst [vmem:[#allocation33_spill] sm:$0xff] %v3295_v53  ;;  %1476 = vmatprep.subr.bf16.mxu1 %v3295_v53  ;;  %v3325_v53 = vld [vmem:[#allocation7 + $0x98] ss:$12 sps:$4 sm:$0xff]  }
  0xbb   :  { %3801 = vst [vmem:[#allocation44_spill] sm:$0xff] %v3325_v53 }
  0xbd   :  { %2358 = vmatpush3.bf16.msra.mxu0 %v3274_v25  ;;  %v3381_v25 = vld [vmem:[#allocation7 + $0x180] ss:$12 sps:$4 sm:$0xff]  }
  0xbe   :  { %2359 = vmatprep.subr.bf16.mxu0 %v3277_v15 }
  0xc0   :  { %763 = vmatmul.mubr.bf16.gmra.mrb[20].mxu0 %v3133_v3  ;;  %v3299_v3 = vld [vmem:[#allocation7 + $0x120] ss:$12 sps:$4 sm:$0xff]  }
  0xc1   :  { %770 = vmatprep.mubr.bf16.mxu0 %v3144_v7  ;;  %2360 = vmatpush3.bf16.msra.mxu0 %v3280_v17  ;;  %3792 = vst [vmem:[#allocation35_spill] sm:$0xff] %v3299_v3  ;;  %v3301_v7 = vld [vmem:[#allocation7 + $0x68] ss:$12 sps:$4 sm:$0xff]  }
  0xc2   :  { %2361 = vmatprep.subr.bf16.mxu0 %v3283_v31  ;;  %3793 = vst [vmem:[#allocation36_spill] sm:$0xff] %v3301_v7  ;;  %1477 = vmatpush1.bf16.msra.mxu1 %v3299_v3  ;;  %v3323_v3 = vld [vmem:[#allocation7 + $0x150] ss:$12 sps:$4 sm:$0xff]  }
  0xc3   :  { %3800 = vst [vmem:[#allocation43_spill] sm:$0xff] %v3323_v3 }
  0xc5   :  { %2362 = vmatpush3.bf16.msra.mxu0 %v3288_v50 }
  0xc6   :  { %2363 = vmatprep.subr.bf16.mxu0 %v3297_v36 }
  0xc8   :  { %771 = vmatmul.mubr.bf16.gmra.mrb[24].mxu0 %v3177_v24  ;;  %v3307_v24 = vld [vmem:[#allocation7 + $0x13c] ss:$12 sps:$4 sm:$0xff]  }
  0xc9   :  { %778 = vmatprep.mubr.bf16.mxu0 %v3188_v29  ;;  %2364 = vmatpush3.bf16.msra.mxu0 %v3301_v7  ;;  %3794 = vst [vmem:[#allocation37_spill] sm:$0xff] %v3307_v24  ;;  %v3309_v29 = vld [vmem:[#allocation7 + $0x140] ss:$12 sps:$4 sm:$0xff]  }
  0xca   :  { %3795 = vst [vmem:[#allocation38_spill] sm:$0xff] %v3309_v29  ;;  %1478 = vmatprep.subr.bf16.mxu1 %v3307_v24  ;;  %2365 = vmatprep.subr.bf16.mxu0 %v3309_v29  ;;  %v3331_v24 = vld [vmem:[#allocation7 + $0x16c] ss:$12 sps:$4 sm:$0xff]  }
  0xcb   :  { %3802 = vst [vmem:[#allocation45_spill] sm:$0xff] %v3331_v24 }
  0xcd   :  { %2366 = vmatpush3.bf16.msra.mxu0 %v3313_v40 }
  0xce   :  { %2367 = vmatprep.subr.bf16.mxu0 %v3321_v51 }
  0xd0   :  { %779 = vmatmul.mubr.bf16.gmra.mrb[28].mxu0 %v3208_v39  ;;  %v3311_v39 = vld [vmem:[#allocation7 + $0x138] ss:$12 sps:$4 sm:$0xff]  }
  0xd1   :  { %3796 = vst [vmem:[#allocation39_spill] sm:$0xff] %v3311_v39  ;;  %1479 = vmatpush1.bf16.msra.mxu1 %v3311_v39  ;;  %2368 = vmatpush3.bf16.msra.mxu0 %v3325_v53  ;;  %v3333_v39 = vld [vmem:[#allocation7 + $0x170] ss:$12 sps:$4 sm:$0xff]  }
  0xd2   :  { %1480 = vmatprep.subr.bf16.mxu1 %v3319_v46  ;;  %3803 = vst [vmem:[#allocation46_spill] sm:$0xff] %v3333_v39  ;;  %2369 = vmatprep.subr.bf16.mxu0 %v3333_v39  ;;  %v3343_v46 = vld [vmem:[#allocation7 + $0x184] ss:$12 sps:$4 sm:$0xff]  }
  0xd3   :  { %3806 = vst [vmem:[#allocation49_spill] sm:$0xff] %v3343_v46 }
  0xd5   :  { %1481 = vmatpush1.bf16.msra.mxu1 %v3323_v3  ;;  %2370 = vmatpush3.bf16.msra.mxu0 %v3337_v55  ;;  %v3346_v3 = vld [vmem:[#allocation7 + $0x188] ss:$12 sps:$4 sm:$0xff]  }
  0xd6   :  { %1482 = vmatprep.subr.bf16.mxu1 %v3331_v24  ;;  %2483 = vmatprep.subr.bf16.mxu0 %v3346_v3 }
  0xd9   :  { %1483 = vmatpush1.bf16.msra.mxu1 %v3335_v10 }
  0xda   :  { %1525 = vmatprep.subr.bf16.mxu1 %v3343_v46 }
 0x133   :  { %v3349_v47 = vpop.f32.mrb[0].mxu1 }
 0x134   :  { %v3351_v28 = vpop.f32.mrb[1].mxu1 }
 0x135   :  { %v3353_v37 = vpop.f32.mrb[2].mxu1 }
 0x136   :  { %v3355_v24 = vpop.f32.mrb[3].mxu1 }
 0x13b   :  { %v3357_v39 = vpop.f32.mrb[4].mxu1 }
 0x13c   :  { %v3359_v10 = vpop.f32.mrb[5].mxu1 }
 0x13d   :  { %v3361_v55 = vpop.f32.mrb[6].mxu1 }
 0x13e   :  { %v3363_v30 = vpop.f32.mrb[7].mxu1 }
 0x16b   :  { %v683_v46 = vpop.f32.mrb[0].mxu0 }
 0x16c   :  { %v852_v53 = vsub.f32 %v3093_v44, %v683_v46  ;;  %v685_v27 = vpop.f32.mrb[1].mxu0 }
 0x16d   :  { %v853_v51 = vsub.f32 %v3081_v13, %v685_v27  ;;  %v687_v9 = vpop.f32.mrb[2].mxu0 }
 0x16e   :  { %v855_v40 = vsub.f32 %v3095_v45, %v687_v9  ;;  %v689_v6 = vpop.f32.mrb[3].mxu0  ;;  %v876_v54 = vmul.f32 %v852_v53, %v852_v53 }
 0x16f   :  { %v856_v29 = vsub.f32 %v3083_v14, %v689_v6  ;;  %v877_v52 = vmul.f32 %v853_v51, %v853_v51 }
 0x170   :  { %v879_v7 = vmul.f32 %v855_v40, %v855_v40 }
 0x171   :  { %v880_v36 = vmul.f32 %v856_v29, %v856_v29 }
 0x172   :  { %v3369_v43 = vpack.c.bf16 %v879_v7, %v876_v54 }
 0x173   :  { %v3371_v50 = vpack.c.bf16 %v880_v36, %v877_v52  ;;  %v693_v42 = vpop.f32.mrb[4].mxu0 }
 0x174   :  { %3807 = vst [vmem:[#allocation50_spill] sm:$0xff] %v3369_v43  ;;  %v912_v44 = vunpack.c.l.bf16 %v3369_v43  ;;  %v915_v46 = vunpack.c.h.bf16 %v3369_v43  ;;  %v858_v13 = vsub.f32 %v3109_v56, %v693_v42  ;;  %v695_v27 = vpop.f32.mrb[5].mxu0 }
 0x175   :  { %v916_v45 = vunpack.c.h.bf16 %v3371_v50  ;;  %v859_v14 = vsub.f32 %v3097_v48, %v695_v27  ;;  %v697_v6 = vpop.f32.mrb[6].mxu0  ;;  %v913_v51 = vunpack.c.l.bf16 %v3371_v50  ;;  %v3385_v27 = vld [vmem:[#allocation7 + $0x19c] ss:$12 sps:$4 sm:$0xff]  }
 0x176   :  { %v936_v9 = vsub.f32 %v876_v54, %v912_v44  ;;  %v939_v53 = vsub.f32 %v879_v7, %v915_v46  ;;  %v861_v29 = vsub.f32 %v3111_v57, %v697_v6  ;;  %v699_v40 = vpop.f32.mrb[7].mxu0  ;;  %v882_v38 = vmul.f32 %v858_v13, %v858_v13  ;;  %v3397_v46 = vld [vmem:[#allocation7 + $0x198] ss:$12 sps:$4 sm:$0xff]  }
 0x177   :  { %v940_v31 = vsub.f32 %v880_v36, %v916_v45  ;;  %v862_v41 = vsub.f32 %v3099_v49, %v699_v40  ;;  %v937_v17 = vsub.f32 %v877_v52, %v913_v51  ;;  %v883_v42 = vmul.f32 %v859_v14, %v859_v14  ;;  %v3389_v36 = vld [vmem:[#allocation7 + $0x1a0] ss:$12 sps:$4 sm:$0xff]   ;;  %v3405_v6 = vld [vmem:[#allocation7 + $0x1b8] ss:$12 sps:$4 sm:$0xff]  }
 0x178   :  { %v960_v43 = vpack.c.bf16 %v939_v53, %v936_v9  ;;  %v885_v56 = vmul.f32 %v861_v29, %v861_v29  ;;  %v3403_v14 = vld [vmem:[#allocation7 + $0x1b4] ss:$12 sps:$4 sm:$0xff]  }
 0x179   :  { %v886_v15 = vmul.f32 %v862_v41, %v862_v41  ;;  %v961_v34 = vpack.c.bf16 %v940_v31, %v937_v17  ;;  %3808 = vst [vmem:[#allocation51_spill] sm:$0xff] %v3403_v14 }
 0x17a   :  { %v3383_v48 = vpack.c.bf16 %v885_v56, %v882_v38 }
 0x17b   :  { %v3387_v54 = vpack.c.bf16 %v886_v15, %v883_v42  ;;  %v703_v57 = vpop.f32.mrb[8].mxu0  ;;  %1484 = vmatprep.mubr.bf16.mxu1 %v961_v34  ;;  %1630 = vmatprep.mubr.bf16.mxu0 %v961_v34 }
 0x17c   :  { %v921_v49 = vunpack.c.h.bf16 %v3383_v48  ;;  %v864_v52 = vsub.f32 %v3151_v11, %v703_v57  ;;  %v705_v7 = vpop.f32.mrb[9].mxu0  ;;  %1485 = vmatmul.mubr.bf16.vlgmr.msra.gmra.mrb[8].mxu1 %v960_v43  ;;  %1631 = vmatmul.mubr.bf16.vlgmr.msra.gmra.mrb[32].mxu0 %v960_v43  ;;  %v918_v41 = vunpack.c.l.bf16 %v3383_v48 }
 0x17d   :  { %v922_v17 = vunpack.c.h.bf16 %v3387_v54  ;;  %v865_v31 = vsub.f32 %v3114_v59, %v705_v7  ;;  %v707_v44 = vpop.f32.mrb[10].mxu0  ;;  %1526 = vmatpush1.bf16.msra.mxu1 %v3381_v25  ;;  %v919_v34 = vunpack.c.l.bf16 %v3387_v54  ;;  %2484 = vmatpush3.bf16.msra.mxu0 %v3346_v3 }
 0x17e   :  { %v945_v13 = vsub.f32 %v885_v56, %v921_v49  ;;  %v867_v11 = vsub.f32 %v3153_v12, %v707_v44  ;;  %v709_v45 = vpop.f32.mrb[11].mxu0  ;;  %1527 = vmatprep.subr.bf16.mxu1 %v3385_v27  ;;  %v942_v43 = vsub.f32 %v882_v38, %v918_v41  ;;  %2485 = vmatprep.subr.bf16.mxu0 %v3389_v36  ;;  %v3410_v49 = vld [vmem:[#allocation7 + $0x1b0] ss:$12 sps:$4 sm:$0xff]  }
 0x17f   :  { %v946_v59 = vsub.f32 %v886_v15, %v922_v17  ;;  %v868_v51 = vsub.f32 %v3116_v60, %v709_v45  ;;  %v943_v9 = vsub.f32 %v883_v42, %v919_v34  ;;  %v888_v53 = vmul.f32 %v864_v52, %v864_v52  ;;  %3809 = vst [vmem:[#allocation52_spill] sm:$0xff] %v3410_v49  ;;  %v3416_v60 = vld [vmem:[#allocation7 + $0x1cc] ss:$12 sps:$4 sm:$0xff]   ;;  %v3421_v52 = vld [vmem:[#allocation7 + $0x1d0] ss:$12 sps:$4 sm:$0xff]  }
 0x180   :  { %v891_v29 = vmul.f32 %v867_v11, %v867_v11  ;;  %v963_v40 = vpack.c.bf16 %v945_v13, %v942_v43  ;;  %v889_v56 = vmul.f32 %v865_v31, %v865_v31  ;;  %3810 = vst [vmem:[#allocation53_spill] sm:$0xff] %v3416_v60  ;;  %v3429_v11 = vld [vmem:[#allocation7 + $0x1c8] ss:$12 sps:$4 sm:$0xff]  }
 0x181   :  { %v892_v57 = vmul.f32 %v868_v51, %v868_v51  ;;  %v964_v12 = vpack.c.bf16 %v946_v59, %v943_v9  ;;  %1528 = vmatpush1.bf16.msra.mxu1 %v3397_v46  ;;  %2486 = vmatpush3.bf16.msra.mxu0 %v3389_v36  ;;  %3811 = vst [vmem:[#allocation54_spill] sm:$0xff] %v3429_v11  ;;  %v3435_v9 = vld [vmem:[#allocation7 + $0x1e4] ss:$12 sps:$4 sm:$0xff]  }
 0x182   :  { %v3413_v38 = vpack.c.bf16 %v891_v29, %v888_v53  ;;  %1529 = vmatprep.subr.bf16.mxu1 %v3403_v14  ;;  %2487 = vmatprep.subr.bf16.mxu0 %v3405_v6  ;;  %3812 = vst [vmem:[#allocation55_spill] sm:$0xff] %v3435_v9 }
 0x183   :  { %v3419_v15 = vpack.c.bf16 %v892_v57, %v889_v56  ;;  %v713_v42 = vpop.f32.mrb[12].mxu0  ;;  %1494 = vmatprep.mubr.bf16.mxu1 %v964_v12  ;;  %1638 = vmatprep.mubr.bf16.mxu0 %v964_v12 }
 0x184   :  { %v927_v7 = vunpack.c.h.bf16 %v3413_v38  ;;  %v870_v41 = vsub.f32 %v3195_v33, %v713_v42  ;;  %v715_v17 = vpop.f32.mrb[13].mxu0  ;;  %1495 = vmatmul.mubr.bf16.gmra.mrb[12].mxu1 %v963_v40  ;;  %1639 = vmatmul.mubr.bf16.gmra.mrb[36].mxu0 %v963_v40  ;;  %v924_v31 = vunpack.c.l.bf16 %v3413_v38  ;;  %v3437_v40 = vld [vmem:[#allocation7 + $0x1e8] ss:$12 sps:$4 sm:$0xff]  }
 0x185   :  { %v928_v44 = vunpack.c.h.bf16 %v3419_v15  ;;  %v871_v34 = vsub.f32 %v3160_v18, %v715_v17  ;;  %v717_v13 = vpop.f32.mrb[14].mxu0  ;;  %1530 = vmatpush1.bf16.msra.mxu1 %v3410_v49  ;;  %v925_v45 = vunpack.c.l.bf16 %v3419_v15  ;;  %2488 = vmatpush3.bf16.msra.mxu0 %v3405_v6 }
 0x186   :  { %v951_v43 = vsub.f32 %v891_v29, %v927_v7  ;;  %v873_v33 = vsub.f32 %v3201_v35, %v717_v13  ;;  %v719_v59 = vpop.f32.mrb[15].mxu0  ;;  %1531 = vmatprep.subr.bf16.mxu1 %v3416_v60  ;;  %v948_v51 = vsub.f32 %v888_v53, %v924_v31  ;;  %2489 = vmatprep.subr.bf16.mxu0 %v3421_v52  ;;  %v3442_v13 = vld [vmem:[#allocation7 + $0x1e0] ss:$12 sps:$4 sm:$0xff]   ;;  %v3470_v60 = vld [vmem:[#allocation2 + $0x10] sm:$0xff] }
 0x187   :  { %v952_v18 = vsub.f32 %v892_v57, %v928_v44  ;;  %v874_v12 = vsub.f32 %v3170_v22, %v719_v59  ;;  %v949_v42 = vsub.f32 %v889_v56, %v925_v45  ;;  %v894_v17 = vmul.f32 %v870_v41, %v870_v41  ;;  %3813 = vst [vmem:[#allocation56_spill] sm:$0xff] %v3442_v13  ;;  %v3448_v22 = vld [vmem:[#allocation7 + $0x1fc] ss:$12 sps:$4 sm:$0xff]   ;;  %v3451_v56 = vld [vmem:[#allocation7 + $0x200] ss:$12 sps:$4 sm:$0xff]  }
 0x188   :  { %v897_v49 = vmul.f32 %v873_v33, %v873_v33  ;;  %v966_v14 = vpack.c.bf16 %v951_v43, %v948_v51  ;;  %v895_v29 = vmul.f32 %v871_v34, %v871_v34  ;;  %3814 = vst [vmem:[#allocation57_spill] sm:$0xff] %v3448_v22  ;;  %v3459_v59 = vld [vmem:[#allocation7 + $0x1f8] ss:$12 sps:$4 sm:$0xff]   ;;  %3815 = vst [vmem:[#allocation58_spill] sm:$0xff] %v3470_v60 }
 0x189   :  { %v898_v7 = vmul.f32 %v874_v12, %v874_v12  ;;  %v967_v35 = vpack.c.bf16 %v952_v18, %v949_v42  ;;  %1532 = vmatpush1.bf16.msra.mxu1 %v3429_v11  ;;  %2490 = vmatpush3.bf16.msra.mxu0 %v3421_v52 }
 0x18a   :  { %v3445_v53 = vpack.c.bf16 %v897_v49, %v894_v17  ;;  %1533 = vmatprep.subr.bf16.mxu1 %v3435_v9  ;;  %2491 = vmatprep.subr.bf16.mxu0 %v3437_v40 }
 0x18b   :  { %v3453_v57 = vpack.c.bf16 %v898_v7, %v895_v29  ;;  %v2319_v41 = vpop.f32.mrb[16].mxu0  ;;  %1504 = vmatprep.mubr.bf16.mxu1 %v967_v35  ;;  %1646 = vmatprep.mubr.bf16.mxu0 %v967_v35  ;;  %v3467_v35 = vld [vmem:[#allocation7 + $0x218] ss:$12 sps:$4 sm:$0xff]  }
 0x18c   :  { %v933_v31 = vunpack.c.h.bf16 %v3445_v53  ;;  %v2320_v44 = vpop.f32.mrb[17].mxu0  ;;  %1505 = vmatmul.mubr.bf16.gmra.mrb[16].mxu1 %v966_v14  ;;  %1647 = vmatmul.mubr.bf16.gmra.mrb[40].mxu0 %v966_v14  ;;  %v930_v34 = vunpack.c.l.bf16 %v3445_v53  ;;  %v3464_v14 = vld [vmem:[#allocation7 + $0x214] ss:$12 sps:$4 sm:$0xff]  }
 0x18d   :  { %v934_v45 = vunpack.c.h.bf16 %v3453_v57  ;;  %v2321_v43 = vadd.f32 %v2320_v44, %v2319_v41  ;;  %v2322_v33 = vpop.f32.mrb[18].mxu0  ;;  %1534 = vmatpush1.bf16.msra.mxu1 %v3442_v13  ;;  %v931_v51 = vunpack.c.l.bf16 %v3453_v57  ;;  %2492 = vmatpush3.bf16.msra.mxu0 %v3437_v40 }
 0x18e   :  { %v957_v18 = vsub.f32 %v897_v49, %v933_v31  ;;  %v2323_v12 = vpop.f32.mrb[19].mxu0  ;;  %1535 = vmatprep.subr.bf16.mxu1 %v3448_v22  ;;  %v954_v42 = vsub.f32 %v894_v17, %v930_v34  ;;  %2493 = vmatprep.subr.bf16.mxu0 %v3451_v56  ;;  %v3475_v17 = vld [vmem:[#allocation7 + $0x210] ss:$12 sps:$4 sm:$0xff]  }
 0x18f   :  { %v958_v41 = vsub.f32 %v898_v7, %v934_v45  ;;  %v822_v44 = vadd.f32 %v2321_v43, %v3351_v28  ;;  %v2324_v13 = vadd.f32 %v2323_v12, %v2322_v33  ;;  %v955_v9 = vsub.f32 %v895_v29, %v931_v51  ;;  %v3479_v7 = vld [vmem:[#allocation7 + $0x22c] ss:$12 sps:$4 sm:$0xff]   ;;  %v3488_v51 = vld [vmem:[#allocation7 + $0x228] ss:$12 sps:$4 sm:$0xff]  }
 0x190   :  { %v969_v11 = vpack.c.bf16 %v957_v18, %v954_v42  ;;  %v3482_v28 = vld [vmem:[#allocation2 + $0x28] sm:$0xff]  ;;  %v3817_v18 = vmov 0  }
 0x191   :  { %v854_v49 = vsub.f32 %v3470_v60, %v822_v44  ;;  %v825_v31 = vadd.f32 %v2324_v13, %v3355_v24  ;;  %v970_v22 = vpack.c.bf16 %v958_v41, %v955_v9  ;;  %1536 = vmatpush1.bf16.msra.mxu1 %v3459_v59  ;;  %2494 = vmatpush3.bf16.msra.mxu0 %v3451_v56  ;;  %v3485_v24 = vld [vmem:[#allocation7 + $0x230] ss:$12 sps:$4 sm:$0xff]  }
 0x192   :  { %1537 = vmatprep.subr.bf16.mxu1 %v3464_v14  ;;  %2495 = vmatprep.subr.bf16.mxu0 %v3467_v35  ;;  %3816 = vst [vmem:[#allocation59_spill] sm:$0xff] %v3482_v28 }
 0x193   :  { %v857_v29 = vsub.f32 %v3482_v28, %v825_v31  ;;  %v2325_v34 = vpop.f32.mrb[20].mxu0  ;;  %1514 = vmatprep.mubr.bf16.mxu1 %v970_v22  ;;  %1654 = vmatprep.mubr.bf16.mxu0 %v970_v22  ;;  %v878_v13 = vmul.f32 %v854_v49, %v854_v49 }
 0x194   :  { %v2326_v9 = vpop.f32.mrb[21].mxu0  ;;  %1515 = vmatmul.mubr.bf16.gmra.mrb[20].mxu1 %v969_v11  ;;  %1655 = vmatmul.mubr.bf16.gmra.mrb[44].mxu0 %v969_v11 }
 0x195   :  { %v881_v45 = vmul.f32 %v857_v29, %v857_v29  ;;  %v2327_v43 = vadd.f32 %v2326_v9, %v2325_v34  ;;  %v2328_v33 = vpop.f32.mrb[22].mxu0  ;;  %1538 = vmatpush1.bf16.msra.mxu1 %v3475_v17  ;;  %1557 = vmatprep.mubr.bf16.mxu1 %v3817_v18 }
 0x196   :  { %v2329_v12 = vpop.f32.mrb[23].mxu0  ;;  %1539 = vmatprep.subr.bf16.mxu1 %v3479_v7  ;;  %2496 = vmatpush3.bf16.msra.mxu0 %v3467_v35 }
 0x197   :  { %v3493_v22 = vpack.c.bf16 %v881_v45, %v878_v13  ;;  %v830_v42 = vadd.f32 %v3349_v47, %v2327_v43  ;;  %v2330_v11 = vadd.f32 %v2329_v12, %v2328_v33  ;;  %2497 = vmatprep.subr.bf16.mxu0 %v3485_v24 }
 0x199   :  { %v914_v41 = vunpack.c.l.bf16 %v3493_v22  ;;  %v917_v44 = vunpack.c.h.bf16 %v3493_v22  ;;  %v860_v49 = vsub.f32 %v3118_v61, %v830_v42  ;;  %v833_v31 = vadd.f32 %v3353_v37, %v2330_v11  ;;  %1540 = vmatpush1.bf16.msra.mxu1 %v3488_v51 }
 0x19a   :  { %1728 = vmatprep.subr.bf16.mxu1 %v3120_v62  ;;  %2498 = vmatpush3.bf16.msra.mxu0 %v3485_v24 }
 0x19b   :  { %v938_v29 = vsub.f32 %v878_v13, %v914_v41  ;;  %v941_v34 = vsub.f32 %v881_v45, %v917_v44  ;;  %v863_v47 = vsub.f32 %v3123_v63, %v833_v31  ;;  %v2331_v9 = vpop.f32.mrb[24].mxu0  ;;  %2407 = vmatprep.subr.bf16.mxu0 %v3264_v8  ;;  %v884_v12 = vmul.f32 %v860_v49, %v860_v49 }
 0x19c   :  { %v2332_v43 = vpop.f32.mrb[25].mxu0 }
 0x19d   :  { %v962_v33 = vpack.c.bf16 %v941_v34, %v938_v29  ;;  %v887_v28 = vmul.f32 %v863_v47, %v863_v47  ;;  %v2333_v61 = vadd.f32 %v2332_v43, %v2331_v9  ;;  %v2334_v42 = vpop.f32.mrb[26].mxu0 }
 0x19e   :  { %v2335_v37 = vpop.f32.mrb[27].mxu0 }
 0x19f   :  { %v3506_v11 = vpack.c.bf16 %v887_v28, %v884_v12  ;;  %v2336_v60 = vadd.f32 %v2335_v37, %v2334_v42  ;;  %v838_v62 = vadd.f32 %v2333_v61, %v3359_v10  ;;  %1558 = vmatmul.mubr.bf16.vlgmr.msra.gmra.mrb[8].mxu1 %v962_v33  ;;  %2499 = vmatprep.mubr.bf16.mxu0 %v962_v33  ;;  %v3821_v61 = vld [vmem:[#allocation13_spill] sm:$0xff]  ;;  %v3822_v42 = vld [vmem:[#allocation30_spill] sm:$0xff]  ;;  %v3824_v37 = vld [vmem:[#allocation31_spill] sm:$0xff] }
 0x1a0   :  { %1729 = vmatpush1.bf16.msra.mxu1 %v3129_v2  ;;  %1567 = vmatprep.mubr.bf16.mxu1 %v3817_v18 }
 0x1a1   :  { %v866_v63 = vsub.f32 %v3125_v0, %v838_v62  ;;  %v841_v8 = vadd.f32 %v2336_v60, %v3363_v30  ;;  %1730 = vmatprep.subr.bf16.mxu1 %v3140_v5  ;;  %v920_v13 = vunpack.c.l.bf16 %v3506_v11  ;;  %v923_v45 = vunpack.c.h.bf16 %v3506_v11 }
 0x1a3   :  { %v890_v41 = vmul.f32 %v866_v63, %v866_v63  ;;  %v869_v44 = vsub.f32 %v3127_v1, %v841_v8  ;;  %v2337_v10 = vpop.f32.mrb[28].mxu0  ;;  %v944_v49 = vsub.f32 %v884_v12, %v920_v13  ;;  %v947_v31 = vsub.f32 %v887_v28, %v923_v45  ;;  %v3819_v12 = vld [vmem:[#allocation12_spill] sm:$0xff]  ;;  %v3825_v13 = vld [vmem:[#allocation15_spill] sm:$0xff] }
 0x1a4   :  { %1731 = vmatpush1.bf16.msra.mxu1 %v3157_v16  ;;  %v2338_v2 = vpop.f32.mrb[29].mxu0  ;;  %v3826_v45 = vld [vmem:[#allocation32_spill] sm:$0xff] }
 0x1a5   :  { %v893_v29 = vmul.f32 %v869_v44, %v869_v44  ;;  %v2339_v34 = vadd.f32 %v2338_v2, %v2337_v10  ;;  %v2340_v0 = vpop.f32.mrb[30].mxu0  ;;  %1732 = vmatprep.subr.bf16.mxu1 %v3163_v19  ;;  %v965_v30 = vpack.c.bf16 %v947_v31, %v944_v49  ;;  %v3828_v44 = vld [vmem:[#allocation34_spill] sm:$0xff]  ;;  %v3829_v49 = vld [vmem:[#allocation17_spill] sm:$0xff]  ;;  %v3830_v31 = vld [vmem:[#allocation36_spill] sm:$0xff] }
 0x1a6   :  { %v2341_v5 = vpop.f32.mrb[31].mxu0  ;;  %v3831_v2 = vld [vmem:[#allocation18_spill] sm:$0xff] }
 0x1a7   :  { %v3519_v60 = vpack.c.bf16 %v893_v29, %v890_v41  ;;  %v846_v47 = vadd.f32 %v3357_v39, %v2339_v34  ;;  %v2342_v9 = vadd.f32 %v2341_v5, %v2340_v0  ;;  %1568 = vmatmul.mubr.bf16.gmra.mrb[12].mxu1 %v965_v30  ;;  %2500 = vmatmul.mubr.bf16.vlgmr.msra.gmra.mrb[48].mxu0 %v965_v30  ;;  %v3833_v34 = vld [vmem:[#allocation19_spill] sm:$0xff]  ;;  %v3834_v0 = vld [vmem:[#allocation40_spill] sm:$0xff]  ;;  %v3836_v5 = vld [vmem:[#allocation42_spill] sm:$0xff] }
 0x1a8   :  { %1733 = vmatpush1.bf16.msra.mxu1 %v3173_v23  ;;  %2408 = vmatpush3.bf16.msra.mxu0 %v3266_v4  ;;  %v3818_v4 = vld [vmem:[#allocation28_spill] sm:$0xff] }
 0x1a9   :  { %v929_v1 = vunpack.c.h.bf16 %v3519_v60  ;;  %v872_v16 = vsub.f32 %v3166_v20, %v846_v47  ;;  %v849_v28 = vadd.f32 %v3361_v55, %v2342_v9  ;;  %1734 = vmatprep.subr.bf16.mxu1 %v3184_v26  ;;  %2409 = vmatprep.subr.bf16.mxu0 %v3269_v58  ;;  %v926_v19 = vunpack.c.l.bf16 %v3519_v60  ;;  %v3820_v55 = vld [vmem:[#allocation29_spill] sm:$0xff]  ;;  %v3835_v30 = vld [vmem:[#allocation20_spill] sm:$0xff] }
 0x1aa   :  { %1577 = vmatprep.mubr.bf16.mxu1 %v3817_v18  ;;  %v3837_v47 = vld [vmem:[#allocation21_spill] sm:$0xff]  ;;  %v3838_v9 = vld [vmem:[#allocation44_spill] sm:$0xff] }
 0x1ab   :  { %v953_v39 = vsub.f32 %v893_v29, %v929_v1  ;;  %v896_v43 = vmul.f32 %v872_v16, %v872_v16  ;;  %v875_v23 = vsub.f32 %v3168_v21, %v849_v28  ;;  %v950_v33 = vsub.f32 %v890_v41, %v926_v19  ;;  %v3823_v21 = vld [vmem:[#allocation14_spill] sm:$0xff]  ;;  %v3827_v41 = vld [vmem:[#allocation16_spill] sm:$0xff] }
 0x1ac   :  { %1735 = vmatpush1.bf16.msra.mxu1 %v3192_v32  ;;  %2410 = vmatpush3.bf16.msra.mxu0 %v3818_v4  ;;  %v3832_v29 = vld [vmem:[#allocation38_spill] sm:$0xff]  ;;  %v3842_v28 = vld [vmem:[#allocation48_spill] sm:$0xff]  ;;  %v3848_v4 = vld [vmem:[#allocation33_spill] sm:$0xff] }
 0x1ad   :  { %v899_v20 = vmul.f32 %v875_v23, %v875_v23  ;;  %1736 = vmatprep.subr.bf16.mxu1 %v3819_v12  ;;  %2411 = vmatprep.subr.bf16.mxu0 %v3820_v55  ;;  %v968_v26 = vpack.c.bf16 %v953_v39, %v950_v33  ;;  %v3839_v1 = vld [vmem:[#allocation22_spill] sm:$0xff]  ;;  %v3843_v19 = vld [vmem:[#allocation24_spill] sm:$0xff]  ;;  %v3847_v33 = vld [vmem:[#allocation27_spill] sm:$0xff] }
 0x1ae   :  { %v3840_v16 = vld [vmem:[#allocation46_spill] sm:$0xff]  ;;  %v3850_v12 = vld [vmem:[#allocation37_spill] sm:$0xff]  ;;  %v3851_v55 = vld [vmem:[#allocation39_spill] sm:$0xff] }
 0x1af   :  { %v3536_v58 = vpack.c.bf16 %v899_v20, %v896_v43  ;;  %1578 = vmatmul.mubr.bf16.gmra.mrb[16].mxu1 %v968_v26  ;;  %2503 = vmatprep.mubr.bf16.mxu0 %v968_v26  ;;  %v3844_v39 = vld [vmem:[#allocation50_spill] sm:$0xff]  ;;  %v3852_v26 = vld [vmem:[#allocation41_spill] sm:$0xff] }
 0x1b0   :  { %1737 = vmatpush1.bf16.msra.mxu1 %v3821_v61  ;;  %2412 = vmatpush3.bf16.msra.mxu0 %v3822_v42  ;;  %v3846_v23 = vld [vmem:[#allocation26_spill] sm:$0xff]  ;;  %v3853_v61 = vld [vmem:[#allocation43_spill] sm:$0xff]  ;;  %v3854_v42 = vld [vmem:[#allocation45_spill] sm:$0xff] }
 0x1b1   :  { %1738 = vmatprep.subr.bf16.mxu1 %v3823_v21  ;;  %2413 = vmatprep.subr.bf16.mxu0 %v3824_v37  ;;  %v932_v32 = vunpack.c.l.bf16 %v3536_v58  ;;  %v935_v62 = vunpack.c.h.bf16 %v3536_v58  ;;  %v3855_v21 = vld [vmem:[#allocation47_spill] sm:$0xff]  ;;  %v3856_v37 = vld [vmem:[#allocation49_spill] sm:$0xff] }
 0x1b2   :  { %1587 = vmatprep.mubr.bf16.mxu1 %v3817_v18 }
 0x1b3   :  { %v956_v63 = vsub.f32 %v896_v43, %v932_v32  ;;  %v959_v8 = vsub.f32 %v899_v20, %v935_v62  ;;  %v3845_v43 = vld [vmem:[#allocation25_spill] sm:$0xff]  ;;  %v3849_v20 = vld [vmem:[#allocation35_spill] sm:$0xff]  ;;  %v3860_v62 = vld [vmem:[#allocation54_spill] sm:$0xff] }
 0x1b4   :  { %1739 = vmatpush1.bf16.msra.mxu1 %v3825_v13  ;;  %2414 = vmatpush3.bf16.msra.mxu0 %v3826_v45  ;;  %v3857_v32 = vld [vmem:[#allocation51_spill] sm:$0xff] }
 0x1b5   :  { %1740 = vmatprep.subr.bf16.mxu1 %v3827_v41  ;;  %2415 = vmatprep.subr.bf16.mxu0 %v3828_v44  ;;  %v971_v10 = vpack.c.bf16 %v959_v8, %v956_v63  ;;  %v3863_v63 = vld [vmem:[#allocation57_spill] sm:$0xff] }
 0x1b7   :  { %1588 = vmatmul.mubr.bf16.gmra.mrb[20].mxu1 %v971_v10  ;;  %2504 = vmatmul.mubr.bf16.gmra.mrb[52].mxu0 %v971_v10 }
 0x1b8   :  { %1741 = vmatpush1.bf16.msra.mxu1 %v3829_v49  ;;  %2416 = vmatpush3.bf16.msra.mxu0 %v3830_v31 }
 0x1b9   :  { %1760 = vmatprep.mubr.bf16.mxu1 %v3371_v50  ;;  %1906 = vmatprep.mubr.bf16.mxu0 %v3371_v50  ;;  %v3841_v50 = vld [vmem:[#allocation23_spill] sm:$0xff] }
 0x1ba   :  { %1742 = vmatprep.subr.bf16.mxu1 %v3831_v2  ;;  %2417 = vmatprep.subr.bf16.mxu0 %v3832_v29 }
 0x1bc   :  { %1743 = vmatpush1.bf16.msra.mxu1 %v3833_v34  ;;  %2418 = vmatpush3.bf16.msra.mxu0 %v3834_v0 }
 0x1bd   :  { %1744 = vmatprep.subr.bf16.mxu1 %v3835_v30  ;;  %2419 = vmatprep.subr.bf16.mxu0 %v3836_v5 }
 0x1c0   :  { %1745 = vmatpush1.bf16.msra.mxu1 %v3837_v47  ;;  %2420 = vmatpush3.bf16.msra.mxu0 %v3838_v9 }
 0x1c1   :  { %1746 = vmatprep.subr.bf16.mxu1 %v3839_v1  ;;  %2421 = vmatprep.subr.bf16.mxu0 %v3840_v16 }
 0x1c4   :  { %1747 = vmatpush1.bf16.msra.mxu1 %v3841_v50  ;;  %2422 = vmatpush3.bf16.msra.mxu0 %v3842_v28 }
 0x1c5   :  { %1748 = vmatprep.subr.bf16.mxu1 %v3843_v19  ;;  %2507 = vmatprep.subr.bf16.mxu0 %v3346_v3 }
 0x1c7   :  { %1907 = vmatmul.mubr.bf16.vlgmr.msra.gmra.mrb[56].mxu0 %v3844_v39 }
 0x1c8   :  { %1749 = vmatpush1.bf16.msra.mxu1 %v3845_v43  ;;  %1914 = vmatprep.mubr.bf16.mxu0 %v3387_v54 }
 0x1c9   :  { %2508 = vmatpush3.bf16.msra.mxu0 %v3346_v3  ;;  %1750 = vmatprep.subr.bf16.mxu1 %v3846_v23 }
 0x1ca   :  { %2509 = vmatprep.subr.bf16.mxu0 %v3389_v36 }
 0x1cc   :  { %1751 = vmatpush1.bf16.msra.mxu1 %v3847_v33 }
 0x1cd   :  { %2510 = vmatpush3.bf16.msra.mxu0 %v3389_v36  ;;  %1752 = vmatprep.subr.bf16.mxu1 %v3848_v4 }
 0x1ce   :  { %2511 = vmatprep.subr.bf16.mxu0 %v3405_v6 }
 0x1cf   :  { %1915 = vmatmul.mubr.bf16.gmra.mrb[60].mxu0 %v3383_v48 }
 0x1d0   :  { %1753 = vmatpush1.bf16.msra.mxu1 %v3849_v20  ;;  %1922 = vmatprep.mubr.bf16.mxu0 %v3419_v15 }
 0x1d1   :  { %2512 = vmatpush3.bf16.msra.mxu0 %v3405_v6  ;;  %1754 = vmatprep.subr.bf16.mxu1 %v3850_v12 }
 0x1d2   :  { %2513 = vmatprep.subr.bf16.mxu0 %v3421_v52 }
 0x1d4   :  { %1755 = vmatpush1.bf16.msra.mxu1 %v3851_v55 }
 0x1d5   :  { %2514 = vmatpush3.bf16.msra.mxu0 %v3421_v52  ;;  %1756 = vmatprep.subr.bf16.mxu1 %v3852_v26 }
 0x1d6   :  { %2515 = vmatprep.subr.bf16.mxu0 %v3437_v40 }
 0x1d7   :  { %1923 = vmatmul.mubr.bf16.gmra.mrb[64].mxu0 %v3413_v38 }
 0x1d8   :  { %1757 = vmatpush1.bf16.msra.mxu1 %v3853_v61  ;;  %1930 = vmatprep.mubr.bf16.mxu0 %v3453_v57 }
 0x1d9   :  { %2516 = vmatpush3.bf16.msra.mxu0 %v3437_v40  ;;  %1758 = vmatprep.subr.bf16.mxu1 %v3854_v42 }
 0x1da   :  { %2517 = vmatprep.subr.bf16.mxu0 %v3451_v56 }
 0x1dc   :  { %1759 = vmatpush1.bf16.msra.mxu1 %v3855_v21 }
 0x1dd   :  { %2518 = vmatpush3.bf16.msra.mxu0 %v3451_v56  ;;  %1801 = vmatprep.subr.bf16.mxu1 %v3856_v37 }
 0x1de   :  { %2519 = vmatprep.subr.bf16.mxu0 %v3467_v35 }
 0x1df   :  { %1761 = vmatmul.mubr.bf16.vlgmr.msra.gmra.mrb[8].mxu1 %v3844_v39  ;;  %1931 = vmatmul.mubr.bf16.gmra.mrb[68].mxu0 %v3445_v53 }
 0x1e0   :  { %1770 = vmatprep.mubr.bf16.mxu1 %v3387_v54  ;;  %1802 = vmatpush1.bf16.msra.mxu1 %v3381_v25  ;;  %v3858_v25 = vld [vmem:[#allocation52_spill] sm:$0xff]  ;;  %v3859_v54 = vld [vmem:[#allocation53_spill] sm:$0xff] }
 0x1e1   :  { %2520 = vmatpush3.bf16.msra.mxu0 %v3467_v35  ;;  %2523 = vmatprep.mubr.bf16.mxu0 %v3493_v22 }
 0x1e2   :  { %1803 = vmatprep.subr.bf16.mxu1 %v3385_v27  ;;  %2521 = vmatprep.subr.bf16.mxu0 %v3485_v24  ;;  %v3861_v27 = vld [vmem:[#allocation55_spill] sm:$0xff] }
 0x1e4   :  { %1804 = vmatpush1.bf16.msra.mxu1 %v3397_v46  ;;  %v3862_v46 = vld [vmem:[#allocation56_spill] sm:$0xff] }
 0x1e5   :  { %2522 = vmatpush3.bf16.msra.mxu0 %v3485_v24  ;;  %1805 = vmatprep.subr.bf16.mxu1 %v3857_v32 }
 0x1e7   :  { %1771 = vmatmul.mubr.bf16.gmra.mrb[12].mxu1 %v3383_v48 }
 0x1e8   :  { %2524 = vmatmul.mubr.bf16.vlgmr.msra.gmra.mrb[48].mxu0 %v3506_v11  ;;  %1780 = vmatprep.mubr.bf16.mxu1 %v3419_v15 }
 0x1e9   :  { %1806 = vmatpush1.bf16.msra.mxu1 %v3858_v25 }
 0x1ea   :  { %1807 = vmatprep.subr.bf16.mxu1 %v3859_v54 }
 0x1ed   :  { %1808 = vmatpush1.bf16.msra.mxu1 %v3860_v62 }
 0x1ee   :  { %1809 = vmatprep.subr.bf16.mxu1 %v3861_v27 }
 0x1ef   :  { %1781 = vmatmul.mubr.bf16.gmra.mrb[16].mxu1 %v3413_v38 }
 0x1f0   :  { %1790 = vmatprep.mubr.bf16.mxu1 %v3453_v57 }
 0x1f1   :  { %1810 = vmatpush1.bf16.msra.mxu1 %v3862_v46 }
 0x1f2   :  { %1811 = vmatprep.subr.bf16.mxu1 %v3863_v63 }
 0x1f5   :  { %1812 = vmatpush1.bf16.msra.mxu1 %v3459_v59 }
 0x1f6   :  { %1813 = vmatprep.subr.bf16.mxu1 %v3464_v14 }
 0x1f7   :  { %1791 = vmatmul.mubr.bf16.gmra.mrb[20].mxu1 %v3445_v53 }
 0x1f8   :  { %1833 = vmatprep.mubr.bf16.mxu1 %v3817_v18 }
 0x1f9   :  { %1814 = vmatpush1.bf16.msra.mxu1 %v3475_v17 }
 0x1fa   :  { %1815 = vmatprep.subr.bf16.mxu1 %v3479_v7 }
 0x1fd   :  { %1816 = vmatpush1.bf16.msra.mxu1 %v3488_v51 }
 0x1fe   :  { %2531 = vmatprep.subr.bf16.mxu1 %v3346_v3 }
 0x200   :  { %1834 = vmatmul.mubr.bf16.vlgmr.msra.gmra.mrb[8].mxu1 %v3493_v22 }
 0x201   :  { %2539 = vmatpush3.bf16.msra.mxu1 %v3346_v3  ;;  %1843 = vmatprep.mubr.bf16.mxu1 %v3817_v18 }
 0x202   :  { %2532 = vmatprep.subr.bf16.mxu1 %v3389_v36 }
 0x205   :  { %2540 = vmatpush3.bf16.msra.mxu1 %v3389_v36 }
 0x206   :  { %2533 = vmatprep.subr.bf16.mxu1 %v3405_v6 }
 0x208   :  { %1844 = vmatmul.mubr.bf16.gmra.mrb[12].mxu1 %v3506_v11 }
 0x209   :  { %2541 = vmatpush3.bf16.msra.mxu1 %v3405_v6  ;;  %1853 = vmatprep.mubr.bf16.mxu1 %v3817_v18 }
 0x20a   :  { %2534 = vmatprep.subr.bf16.mxu1 %v3421_v52 }
 0x20d   :  { %2542 = vmatpush3.bf16.msra.mxu1 %v3421_v52 }
 0x20e   :  { %2535 = vmatprep.subr.bf16.mxu1 %v3437_v40 }
 0x210   :  { %1854 = vmatmul.mubr.bf16.gmra.mrb[16].mxu1 %v3519_v60 }
 0x211   :  { %2543 = vmatpush3.bf16.msra.mxu1 %v3437_v40  ;;  %1863 = vmatprep.mubr.bf16.mxu1 %v3817_v18 }
 0x212   :  { %2536 = vmatprep.subr.bf16.mxu1 %v3451_v56 }
 0x215   :  { %2544 = vmatpush3.bf16.msra.mxu1 %v3451_v56 }
 0x216   :  { %2537 = vmatprep.subr.bf16.mxu1 %v3467_v35 }
 0x218   :  { %1864 = vmatmul.mubr.bf16.gmra.mrb[20].mxu1 %v3536_v58 }
 0x219   :  { %2545 = vmatpush3.bf16.msra.mxu1 %v3467_v35  ;;  %2527 = vmatprep.mubr.bf16.mxu1 %v3519_v60 }
 0x21a   :  { %2538 = vmatprep.subr.bf16.mxu1 %v3485_v24 }
 0x21d   :  { %2546 = vmatpush3.bf16.msra.mxu1 %v3485_v24 }
 0x220   :  { %2528 = vmatmul.mubr.bf16.vlgmr.msra.gmra.mrb[24].mxu1 %v3536_v58 }
 0x24f   :  { %v2371_v3 = vpop.f32.mrb[32].mxu0 }
 0x250   :  { %v2372_v48 = vpop.f32.mrb[33].mxu0 }
 0x251   :  { %v2373_v36 = vadd.f32 %v2372_v48, %v2371_v3  ;;  %v2374_v6 = vpop.f32.mrb[34].mxu0 }
 0x252   :  { %v2375_v38 = vpop.f32.mrb[35].mxu0 }
 0x253   :  { %v2376_v15 = vadd.f32 %v2375_v38, %v2374_v6  ;;  %v2078_v6 = vlaneseq }
 0x257   :  { %v2377_v52 = vpop.f32.mrb[36].mxu0 }
 0x258   :  { %v2378_v40 = vpop.f32.mrb[37].mxu0 }
 0x259   :  { %v2379_v53 = vadd.f32 %v2378_v40, %v2377_v52  ;;  %v2380_v56 = vpop.f32.mrb[38].mxu0 }
 0x25a   :  { %v2381_v57 = vpop.f32.mrb[39].mxu0 }
 0x25b   :  { %v2382_v59 = vadd.f32 %v2381_v57, %v2380_v56 }
 0x25f   :  { %v2383_v14 = vpop.f32.mrb[40].mxu0 }
 0x260   :  { %v2384_v35 = vpop.f32.mrb[41].mxu0 }
 0x261   :  { %v2385_v17 = vadd.f32 %v2384_v35, %v2383_v14  ;;  %v2386_v7 = vpop.f32.mrb[42].mxu0  ;;  %v2079_v14 = vshrl.u32 %v2078_v6, 7 }
 0x262   :  { %v2387_v51 = vpop.f32.mrb[43].mxu0 }
 0x263   :  { %v2388_v24 = vadd.f32 %v2387_v51, %v2386_v7  ;;  %v2076_v7 = vld [vmem:[%s3714_s1] sm:$0x7]  ;;  %s3010_s1 = smov [#allocation8]  }
 0x264   :  { %s2146_s26 = sshll.u32 %s3010_s1, 4  ;;  %s2147_s26 = int_to_ptr.vmem [resolvable:$true] %s2146_s26 }
 0x265   :  { %s2974_s29 = scalar_lea.vmem %s2147_s26, 3072  ;;  %p2979_p11 = scmp.lt.s32.totalorder %s2147_s26, %s2147_s26 }
 0x266   :  { %p2975_p10 = scmp.ne.s32.totalorder %s2147_s26, %s2974_s29  ;;  %p2980_p12 = scmp.lt.s32.totalorder %s2974_s29, %s2974_s29 }
 0x267   :  { %v2389_v18 = vpop.f32.mrb[44].mxu0 }
 0x268   :  { %v2390_v22 = vpop.f32.mrb[45].mxu0  ;;  %p2981_p13 = por %p2980_p12, %p2979_p11 }
 0x269   :  { %v2391_v11 = vadd.f32 %v2390_v22, %v2389_v18  ;;  %v2392_v60 = vpop.f32.mrb[46].mxu0  ;;  %v2886_v22 = vld [vmem:[#allocation2 + $0x40] sm:$0xff] }
 0x26a   :  { %v2393_v58 = vpop.f32.mrb[47].mxu0  ;;  %p2982_p0 = pnand %p2981_p13, %p2975_p10 }
 0x26b   :  { %v2394_v8 = vadd.f32 %v2393_v58, %v2392_v60  ;;  %v3864_v58 = vld [vmem:[#allocation58_spill] sm:$0xff] }
 0x28a   :  { %v2505_v13 = vpop.f32.mrb[52].mxu0 }
 0x28b   :  { %v1722_v45 = vadd.f32 %v2505_v13, %v2391_v11  ;;  %v1713_v41 = vpop.f32.mrb[53].mxu0 }
 0x28c   :  { %v1714_v44 = vadd.f32 %v2385_v17, %v1713_v41  ;;  %v2506_v10 = vpop.f32.mrb[54].mxu0  ;;  %v2088_v17 = vsub.s32 2, %v2079_v14  ;;  %v2887_v41 = vld [vmem:[#allocation2 + $0x58] sm:$0xff] }
 0x28d   :  { %v1725_v49 = vadd.f32 %v2506_v10, %v2394_v8  ;;  %v1716_v31 = vpop.f32.mrb[55].mxu0 }
 0x28e   :  { %v1717_v2 = vadd.f32 %v2388_v24, %v1716_v31  ;;  %v3662_v51 = vrot.slane %v2076_v7, %v2088_v17 }
 0x29a   :  { %v2423_v29 = vpop.f32.mrb[56].mxu0 }
 0x29b   :  { %v2424_v34 = vpop.f32.mrb[57].mxu0 }
 0x29c   :  { %v2425_v0 = vadd.f32 %v2424_v34, %v2423_v29  ;;  %v2426_v30 = vpop.f32.mrb[58].mxu0 }
 0x29d   :  { %v2427_v5 = vpop.f32.mrb[59].mxu0 }
 0x29e   :  { %v2428_v47 = vadd.f32 %v2427_v5, %v2426_v30  ;;  %v2549_v9 = vadd.f32 %v2425_v0, %v2373_v36 }
 0x2a0   :  { %v2553_v1 = vadd.f32 %v2428_v47, %v2376_v15 }
 0x2a2   :  { %v2429_v16 = vpop.f32.mrb[60].mxu0 }
 0x2a3   :  { %v2430_v50 = vpop.f32.mrb[61].mxu0 }
 0x2a4   :  { %v2431_v28 = vadd.f32 %v2430_v50, %v2429_v16  ;;  %v2432_v19 = vpop.f32.mrb[62].mxu0  ;;  %v2080_v50 = vsub.s32 0, %v2079_v14 }
 0x2a5   :  { %v2433_v39 = vpop.f32.mrb[63].mxu0 }
 0x2a6   :  { %v2434_v43 = vadd.f32 %v2433_v39, %v2432_v19  ;;  %v2547_v23 = vadd.f32 %v2431_v28, %v2379_v53  ;;  %v2084_v19 = vsub.s32 1, %v2079_v14 }
 0x2a8   :  { %v2551_v33 = vadd.f32 %v2434_v43, %v2382_v59 }
 0x2aa   :  { %v2435_v4 = vpop.f32.mrb[64].mxu0 }
 0x2ab   :  { %v2436_v20 = vpop.f32.mrb[65].mxu0 }
 0x2ac   :  { %v2437_v12 = vadd.f32 %v2436_v20, %v2435_v4  ;;  %v2438_v55 = vpop.f32.mrb[66].mxu0 }
 0x2ad   :  { %v2439_v26 = vpop.f32.mrb[67].mxu0 }
 0x2ae   :  { %v2440_v61 = vadd.f32 %v2439_v26, %v2438_v55  ;;  %v3651_v42 = vadd.f32 %v2437_v12, %v1714_v44  ;;  %v3670_v12 = vrot.slane %v2076_v7, %v2080_v50 }
 0x2b0   :  { %v3653_v21 = vadd.f32 %v2440_v61, %v1717_v2  ;;  %v3672_v61 = vrot.slane %v2076_v7, %v2084_v19 }
 0x2b2   :  { %v2441_v37 = vpop.f32.mrb[68].mxu0 }
 0x2b3   :  { %v2442_v32 = vpop.f32.mrb[69].mxu0 }
 0x2b4   :  { %v2443_v25 = vadd.f32 %v2442_v32, %v2441_v37  ;;  %v2444_v54 = vpop.f32.mrb[70].mxu0  ;;  %v2888_v32 = vld [vmem:[#allocation2] sm:$0xff] }
 0x2b5   :  { %v2445_v62 = vpop.f32.mrb[71].mxu0 }
 0x2b6   :  { %v2446_v27 = vadd.f32 %v2445_v62, %v2444_v54  ;;  %v3655_v46 = vadd.f32 %v2443_v25, %v1722_v45  ;;  %v2889_v62 = vld [vmem:[#allocation2 + $0x8] sm:$0xff] }
 0x2b8   :  { %v3657_v63 = vadd.f32 %v2446_v27, %v1725_v49  ;;  %v3865_v49 = vld [vmem:[#allocation59_spill] sm:$0xff] }
 0x2bb   :  { %v2525_v3 = vpop.f32.mrb[48].mxu0 }
 0x2bc   :  { %v2548_v48 = vadd.f32 %v2547_v23, %v2525_v3  ;;  %v1973_v36 = vpop.f32.mrb[49].mxu0 }
 0x2bd   :  { %v2550_v38 = vadd.f32 %v2549_v9, %v1973_v36  ;;  %v2526_v15 = vpop.f32.mrb[50].mxu0  ;;  %v2890_v36 = vld [vmem:[#allocation2 + $0x18] sm:$0xff] }
 0x2be   :  { %v2012_v52 = vadd.f32 0.00048, %v2548_v48  ;;  %v2552_v40 = vadd.f32 %v2551_v33, %v2526_v15  ;;  %v1976_v53 = vpop.f32.mrb[51].mxu0 }
 0x2bf   :  { %v2006_v56 = vadd.f32 0.00048, %v2550_v38  ;;  %v2554_v57 = vadd.f32 %v2553_v1, %v1976_v53 }
 0x2c0   :  { %2836 = vrsqrt.f32 %v2012_v52  ;;  %v2015_v59 = vadd.f32 0.00048, %v2552_v40  ;;  %v2891_v52 = vld [vmem:[#allocation2 + $0x20] sm:$0xff] }
 0x2c1   :  { %2838 = vrsqrt.f32 %v2006_v56  ;;  %v2009_v35 = vadd.f32 0.00048, %v2554_v57 }
 0x2c2   :  { %2840 = vrsqrt.f32 %v2015_v59 }
 0x2c3   :  { %2842 = vrsqrt.f32 %v2009_v35 }
 0x2ca   :  { %v2837_v24 = vpop.eup %2836 }
 0x2cb   :  { %v2839_v18 = vpop.eup %2838  ;;  %v2060_v11 = vmul.f32 %v2886_v22, %v2837_v24 }
 0x2cc   :  { %v2841_v60 = vpop.eup %2840  ;;  %v2054_v8 = vmul.f32 %v3864_v58, %v2839_v18 }
 0x2cd   :  { %v2843_v13 = vpop.eup %2842  ;;  %v2101_v45 = vmul.f32 %v3662_v51, %v2060_v11  ;;  %v2063_v44 = vmul.f32 %v2887_v41, %v2841_v60  ;;  %v2892_v11 = vld [vmem:[#allocation2 + $0x30] sm:$0xff] }
 0x2ce   :  { %v2095_v10 = vmul.f32 %v3662_v51, %v2054_v8  ;;  %v2057_v31 = vmul.f32 %v3865_v49, %v2843_v13  ;;  %v2893_v8 = vld [vmem:[#allocation2 + $0x38] sm:$0xff] }
 0x2cf   :  { %2125 = vst [vmem:[#allocation8 + $0x40] sm:$0xff] %v2101_v45  ;;  %v2104_v2 = vmul.f32 %v3662_v51, %v2063_v44  ;;  %v2894_v44 = vld [vmem:[#allocation2 + $0x48] sm:$0xff] }
 0x2d0   :  { %2119 = vst [vmem:[#allocation8 + $0x10] sm:$0xff] %v2095_v10  ;;  %v2098_v29 = vmul.f32 %v3662_v51, %v2057_v31 }
 0x2d1   :  { %2128 = vst [vmem:[#allocation8 + $0x58] sm:$0xff] %v2104_v2  ;;  %v2895_v2 = vld [vmem:[#allocation2 + $0x50] sm:$0xff] }
 0x2d2   :  { %2122 = vst [vmem:[#allocation8 + $0x28] sm:$0xff] %v2098_v29 }
 0x2d3   :  { %v1835_v34 = vpop.f32.mrb[8].mxu1 }
 0x2d4   :  { %v2004_v0 = vadd.f32 0.00048, %v1835_v34  ;;  %v1837_v30 = vpop.f32.mrb[9].mxu1 }
 0x2d5   :  { %v2005_v5 = vadd.f32 0.00048, %v1837_v30  ;;  %v1839_v47 = vpop.f32.mrb[10].mxu1 }
 0x2d6   :  { %2844 = vrsqrt.f32 %v2004_v0  ;;  %v2007_v9 = vadd.f32 0.00048, %v1839_v47  ;;  %v1841_v1 = vpop.f32.mrb[11].mxu1 }
 0x2d7   :  { %2846 = vrsqrt.f32 %v2005_v5  ;;  %v2008_v16 = vadd.f32 0.00048, %v1841_v1 }
 0x2d8   :  { %2848 = vrsqrt.f32 %v2007_v9 }
 0x2d9   :  { %2850 = vrsqrt.f32 %v2008_v16 }
 0x2db   :  { %v1845_v28 = vpop.f32.mrb[12].mxu1 }
 0x2dc   :  { %v2010_v39 = vadd.f32 0.00048, %v1845_v28  ;;  %v1847_v43 = vpop.f32.mrb[13].mxu1 }
 0x2dd   :  { %v2011_v23 = vadd.f32 0.00048, %v1847_v43  ;;  %v1849_v33 = vpop.f32.mrb[14].mxu1 }
 0x2de   :  { %2852 = vrsqrt.f32 %v2010_v39  ;;  %v2013_v4 = vadd.f32 0.00048, %v1849_v33  ;;  %v1851_v20 = vpop.f32.mrb[15].mxu1  ;;  %v2896_v39 = vld [vmem:[#allocation2 + $0x60] sm:$0xff]  ;;  %v2897_v33 = vld [vmem:[#allocation2 + $0x68] sm:$0xff] }
 0x2df   :  { %2854 = vrsqrt.f32 %v2011_v23  ;;  %v2014_v55 = vadd.f32 0.00048, %v1851_v20 }
 0x2e0   :  { %v2845_v26 = vpop.eup %2844  ;;  %2856 = vrsqrt.f32 %v2013_v4 }
 0x2e1   :  { %v2847_v37 = vpop.eup %2846  ;;  %v2052_v25 = vmul.f32 %v2888_v32, %v2845_v26  ;;  %2858 = vrsqrt.f32 %v2014_v55  ;;  %v2898_v26 = vld [vmem:[#allocation2 + $0x78] sm:$0xff] }
 0x2e2   :  { %v2849_v54 = vpop.eup %2848  ;;  %v2053_v27 = vmul.f32 %v2889_v62, %v2847_v37 }
 0x2e3   :  { %v2851_v3 = vpop.eup %2850  ;;  %v2093_v48 = vmul.f32 %v3670_v12, %v2052_v25  ;;  %v2055_v6 = vmul.f32 %v2890_v36, %v2849_v54  ;;  %v1855_v38 = vpop.f32.mrb[16].mxu1  ;;  %v2899_v54 = vld [vmem:[#allocation2 + $0x80] sm:$0xff] }
 0x2e4   :  { %v2094_v15 = vmul.f32 %v3672_v61, %v2053_v27  ;;  %v2056_v40 = vmul.f32 %v2891_v52, %v2851_v3  ;;  %v2016_v53 = vadd.f32 0.00048, %v1855_v38  ;;  %v1857_v56 = vpop.f32.mrb[17].mxu1 }
 0x2e5   :  { %2117 = vst [vmem:[#allocation8] sm:$0xff] %v2093_v48  ;;  %v2096_v57 = vmul.f32 %v3670_v12, %v2055_v6  ;;  %v2017_v59 = vadd.f32 0.00048, %v1857_v56  ;;  %v1859_v14 = vpop.f32.mrb[18].mxu1 }
 0x2e6   :  { %2118 = vst [vmem:[#allocation8 + $0x8] sm:$0xff] %v2094_v15  ;;  %v2097_v35 = vmul.f32 %v3672_v61, %v2056_v40  ;;  %2860 = vrsqrt.f32 %v2016_v53  ;;  %v2019_v17 = vadd.f32 0.00048, %v1859_v14  ;;  %v1861_v7 = vpop.f32.mrb[19].mxu1  ;;  %v2900_v14 = vld [vmem:[#allocation2 + $0x90] sm:$0xff] }
 0x2e7   :  { %2120 = vst [vmem:[#allocation8 + $0x18] sm:$0xff] %v2096_v57  ;;  %2862 = vrsqrt.f32 %v2017_v59  ;;  %v2020_v24 = vadd.f32 0.00048, %v1861_v7  ;;  %v2901_v7 = vld [vmem:[#allocation2 + $0x98] sm:$0xff] }
 0x2e8   :  { %v2853_v18 = vpop.eup %2852  ;;  %2121 = vst [vmem:[#allocation8 + $0x20] sm:$0xff] %v2097_v35  ;;  %2864 = vrsqrt.f32 %v2019_v17 }
 0x2e9   :  { %v2855_v22 = vpop.eup %2854  ;;  %v2058_v60 = vmul.f32 %v2892_v11, %v2853_v18  ;;  %2866 = vrsqrt.f32 %v2020_v24 }
 0x2ea   :  { %v2857_v58 = vpop.eup %2856  ;;  %v2059_v13 = vmul.f32 %v2893_v8, %v2855_v22  ;;  %v2902_v22 = vld [vmem:[#allocation2 + $0xa8] sm:$0xff] }
 0x2eb   :  { %v2859_v45 = vpop.eup %2858  ;;  %v2099_v41 = vmul.f32 %v3670_v12, %v2058_v60  ;;  %v2061_v10 = vmul.f32 %v2894_v44, %v2857_v58  ;;  %v1865_v49 = vpop.f32.mrb[20].mxu1  ;;  %v2903_v60 = vld [vmem:[#allocation2 + $0xb0] sm:$0xff]  ;;  %v2904_v44 = vld [vmem:[#allocation2 + $0xa0] sm:$0xff] }
 0x2ec   :  { %v2100_v31 = vmul.f32 %v3672_v61, %v2059_v13  ;;  %v2062_v29 = vmul.f32 %v2895_v2, %v2859_v45  ;;  %v2022_v34 = vadd.f32 0.00048, %v1865_v49  ;;  %v1867_v0 = vpop.f32.mrb[21].mxu1 }
 0x2ed   :  { %2123 = vst [vmem:[#allocation8 + $0x30] sm:$0xff] %v2099_v41  ;;  %v2102_v30 = vmul.f32 %v3670_v12, %v2061_v10  ;;  %v2023_v5 = vadd.f32 0.00048, %v1867_v0  ;;  %v1869_v47 = vpop.f32.mrb[22].mxu1  ;;  %v2906_v0 = vld [vmem:[#allocation2 + $0xb8] sm:$0xff] }
 0x2ee   :  { %2124 = vst [vmem:[#allocation8 + $0x38] sm:$0xff] %v2100_v31  ;;  %v2103_v9 = vmul.f32 %v3672_v61, %v2062_v29  ;;  %2868 = vrsqrt.f32 %v2022_v34  ;;  %v2025_v1 = vadd.f32 0.00048, %v1869_v47  ;;  %v1871_v16 = vpop.f32.mrb[23].mxu1  ;;  %v2905_v31 = vld [vmem:[#allocation2 + $0x70] sm:$0xff] }
 0x2ef   :  { %2126 = vst [vmem:[#allocation8 + $0x48] sm:$0xff] %v2102_v30  ;;  %2870 = vrsqrt.f32 %v2023_v5  ;;  %v2026_v50 = vadd.f32 0.00048, %v1871_v16  ;;  %v2907_v5 = vld [vmem:[#allocation2 + $0x88] sm:$0xff] }
 0x2f0   :  { %v2861_v28 = vpop.eup %2860  ;;  %2127 = vst [vmem:[#allocation8 + $0x50] sm:$0xff] %v2103_v9  ;;  %2872 = vrsqrt.f32 %v2025_v1 }
 0x2f1   :  { %v2863_v19 = vpop.eup %2862  ;;  %v2064_v43 = vmul.f32 %v2896_v39, %v2861_v28  ;;  %2874 = vrsqrt.f32 %v2026_v50 }
 0x2f2   :  { %v2865_v23 = vpop.eup %2864  ;;  %v2065_v4 = vmul.f32 %v2897_v33, %v2863_v19 }
 0x2f3   :  { %v2867_v20 = vpop.eup %2866  ;;  %v2105_v55 = vmul.f32 %v3670_v12, %v2064_v43  ;;  %v2067_v37 = vmul.f32 %v2898_v26, %v2865_v23  ;;  %v2529_v32 = vpop.f32.mrb[24].mxu1 }
 0x2f4   :  { %v2106_v25 = vmul.f32 %v3672_v61, %v2065_v4  ;;  %v2068_v62 = vmul.f32 %v2899_v54, %v2867_v20  ;;  %v1998_v27 = vadd.f32 %v2529_v32, %v3655_v46  ;;  %v1989_v3 = vpop.f32.mrb[25].mxu1 }
 0x2f5   :  { %2129 = vst [vmem:[#allocation8 + $0x60] sm:$0xff] %v2105_v55  ;;  %v2108_v48 = vmul.f32 %v3670_v12, %v2067_v37  ;;  %v1990_v36 = vadd.f32 %v1989_v3, %v3651_v42  ;;  %v2530_v6 = vpop.f32.mrb[26].mxu1 }
 0x2f6   :  { %2130 = vst [vmem:[#allocation8 + $0x68] sm:$0xff] %v2106_v25  ;;  %v2109_v38 = vmul.f32 %v3672_v61, %v2068_v62  ;;  %v2024_v15 = vadd.f32 0.00048, %v1998_v27  ;;  %v2001_v52 = vadd.f32 %v2530_v6, %v3657_v63  ;;  %v1992_v40 = vpop.f32.mrb[27].mxu1 }
 0x2f7   :  { %2132 = vst [vmem:[#allocation8 + $0x78] sm:$0xff] %v2108_v48  ;;  %v2018_v53 = vadd.f32 0.00048, %v1990_v36  ;;  %v1993_v56 = vadd.f32 %v1992_v40, %v3653_v21 }
 0x2f8   :  { %v2869_v57 = vpop.eup %2868  ;;  %2133 = vst [vmem:[#allocation8 + $0x80] sm:$0xff] %v2109_v38  ;;  %2876 = vrsqrt.f32 %v2024_v15  ;;  %v2027_v46 = vadd.f32 0.00048, %v2001_v52 }
 0x2f9   :  { %v2871_v59 = vpop.eup %2870  ;;  %v2070_v35 = vmul.f32 %v2900_v14, %v2869_v57  ;;  %2878 = vrsqrt.f32 %v2018_v53  ;;  %v2021_v42 = vadd.f32 0.00048, %v1993_v56 }
 0x2fa   :  { %v2873_v17 = vpop.eup %2872  ;;  %v2071_v24 = vmul.f32 %v2901_v7, %v2871_v59  ;;  %2880 = vrsqrt.f32 %v2027_v46 }
 0x2fb   :  { %v2875_v18 = vpop.eup %2874  ;;  %v2111_v63 = vmul.f32 %v3670_v12, %v2070_v35  ;;  %v2073_v11 = vmul.f32 %v2902_v22, %v2873_v17  ;;  %2882 = vrsqrt.f32 %v2021_v42 }
 0x2fc   :  { %v2112_v21 = vmul.f32 %v3672_v61, %v2071_v24  ;;  %v2074_v58 = vmul.f32 %v2903_v60, %v2875_v18 }
 0x2fd   :  { %2135 = vst [vmem:[#allocation8 + $0x90] sm:$0xff] %v2111_v63  ;;  %v2114_v8 = vmul.f32 %v3670_v12, %v2073_v11 }
 0x2fe   :  { %2136 = vst [vmem:[#allocation8 + $0x98] sm:$0xff] %v2112_v21  ;;  %v2115_v13 = vmul.f32 %v3672_v61, %v2074_v58 }
 0x2ff   :  { %2138 = vst [vmem:[#allocation8 + $0xa8] sm:$0xff] %v2114_v8 }
 0x300   :  { %2139 = vst [vmem:[#allocation8 + $0xb0] sm:$0xff] %v2115_v13 }
 0x302   :  { %v2877_v45 = vpop.eup %2876 }
 0x303   :  { %v2879_v41 = vpop.eup %2878  ;;  %v2072_v10 = vmul.f32 %v2904_v44, %v2877_v45 }
 0x304   :  { %v2881_v49 = vpop.eup %2880  ;;  %v2066_v2 = vmul.f32 %v2905_v31, %v2879_v41 }
 0x305   :  { %v2883_v29 = vpop.eup %2882  ;;  %v2113_v34 = vmul.f32 %v3662_v51, %v2072_v10  ;;  %v2075_v30 = vmul.f32 %v2906_v0, %v2881_v49 }
 0x306   :  { %v2107_v12 = vmul.f32 %v3662_v51, %v2066_v2  ;;  %v2069_v61 = vmul.f32 %v2907_v5, %v2883_v29 }
 0x307   :  { %2137 = vst [vmem:[#allocation8 + $0xa0] sm:$0xff] %v2113_v34  ;;  %v2116_v47 = vmul.f32 %v3662_v51, %v2075_v30 }
 0x308   :  { %2131 = vst [vmem:[#allocation8 + $0x70] sm:$0xff] %v2107_v12  ;;  %v2110_v9 = vmul.f32 %v3662_v51, %v2069_v61 }
 0x309   :  { %2140 = vst [vmem:[#allocation8 + $0xb8] sm:$0xff] %v2116_v47 }
 0x30a   :  { %2134 = vst [vmem:[#allocation8 + $0x88] sm:$0xff] %v2110_v9 }
 0x30b   :  { %2985 = shalt.err (!%p2982_p0)
}
 0x30c   :  { %s2986_s6 = scalar_lea.hbm %s3717_s4, 3072 }
 0x30d   :  { %p2987_p1 = scmp.ne.s32.totalorder %s3717_s4, %s2986_s6  ;;  %p2990_p2 = scmp.lt.u32.totalorder %s2986_s6, %s3717_s4 }
 0x30f   :  { %p2992_p3 = pnand %p2990_p2, %p2987_p1 }
 0x311   :  { %2995 = shalt.err (!%p2992_p3)
}
 0x312   :  { %2152 = dma.vmem_to_hbm [thread:$0]  %s2147_s26, 3072, %s3717_s4, [#allocation4], %s3006_s2, %s3006_s2, %s3007_s13  }
 0x313   :  { %3000 = dma.done.wait [#allocation4], 3072  }
 0x314   :  { %3001 = vsyncadd [#allocation4], 4294964224 }
 0x315   :  { %2156 = vsyncpa [#allocation3], 1 }
 0x316   :  { %2157 = vsyncpa [#allocation6], 1 }
 0x317   :  { %2158 = vsyncpa [#allocation4], 1 }

</bundles_post_ra>
